<compile_context>
chip_gen: v5e
topology: v5e:2x2
jax: 0.10.0
libtpu: 0.0.40
codegen_flags: <defaults>
</compile_context>

<pallas_src>
import jax
import jax.numpy as jnp
from jax.experimental import pallas as pl
from jax.experimental.pallas import tpu as pltpu

EPS = 1e-12           # eps of torch.nn.functional.normalize
HEAD_WIDTH = 128      # lane-dense packed width for the two fused Linear heads


# ------------------------------ sizing helpers ------------------------------

def _round_up(x, m):
    return (x + m - 1) // m * m


def _vmem_capacity_bytes():
    """Per-core VMEM capacity; conservative (v7x, 64 MiB) fallback if unknown."""
    try:
        return int(pltpu.get_tpu_info().vmem_capacity_bytes)
    except Exception:
        return 64 * 1024 * 1024


def _tile_divisor(npad, cap):
    """Largest multiple of 128 that divides npad and is <= cap (>= 128)."""
    q = npad // 128
    best = 1
    d = 1
    while d * d <= q:
        if q % d == 0:
            for e in (d, q // d):
                if e * 128 <= cap:
                    best = max(best, e)
        d += 1
    return best * 128


def _fused_fits(npad, vmem_cap):
    a_bytes = npad * npad * 2                      # resident bf16 A_hat
    work = 6 * npad * 128 * 4 + (8 << 20)          # H0/out/intermediates + slack
    return a_bytes + work <= int(0.45 * vmem_cap)


def _choose_stream_tiles(npad, vmem_cap):
    """(tm, tk): big A tiles within budget; >=2 row tiles when npad >= 256."""
    tm = _tile_divisor(npad, min(512, max(128, npad // 2)))
    budget = int(0.8 * vmem_cap)
    fixed = (2 * npad * 128 * 2          # resident bf16 H (lane-padded, 2 bufs)
             + 2 * tm * 128 * 4          # output block (double-buffered)
             + tm * 128 * 4              # f32 accumulator scratch
             + (4 << 20))                # weights + compiler slack
    a_budget = max(budget - fixed, 2 * tm * 128 * 2 * 2)
    tk_cap = a_budget // (2 * tm * 2)    # double-buffered bf16 A tile
    tk = _tile_divisor(npad, min(4096, max(128, tk_cap)))
    return tm, tk


def _stream_vmem_limit(npad, tm, tk, vmem_cap):
    footprint = (2 * tm * tk * 2         # double-buffered bf16 A tile
                 + 2 * npad * 128 * 2    # resident bf16 H
                 + 2 * tm * 128 * 4      # output block
                 + tm * 128 * 4          # acc scratch
                 + (2 << 20))            # weights / bias / misc
    return int(min(0.9 * vmem_cap, max(footprint + (16 << 20), 32 << 20)))


def _fused_vmem_limit(npad, vmem_cap):
    footprint = npad * npad * 2 + 8 * npad * 128 * 4
    return int(min(0.9 * vmem_cap, max(footprint + (16 << 20), 32 << 20)))


# ------------------------------ Pallas kernels ------------------------------

def _norm_relu(agg):
    # F.normalize(x, p=2, dim=1) followed by ReLU; rsqrt runs in the EUP slot.
    ss = jnp.sum(agg * agg, axis=1, keepdims=True)
    inv = jax.lax.rsqrt(jnp.maximum(ss, EPS * EPS))
    return jnp.maximum(agg * inv, 0.0)


def gcn_fused_kernel(a_ref, h0_ref, w1_ref, b1_ref, w2_ref, b2_ref,
                     w3_ref, b3_ref, wp_ref, bp_ref, out_ref):
    """All 3 GCN layers + fused heads with A_hat resident in VMEM."""
    def layer(h_bf16, w_ref, b_ref):
        # GCNConv: (X @ W) propagated by A_hat, then + bias.
        hw = jnp.dot(h_bf16, w_ref[...], preferred_element_type=jnp.float32)
        agg = jnp.dot(a_ref[...], hw.astype(jnp.bfloat16),
                      preferred_element_type=jnp.float32) + b_ref[...]
        return _norm_relu(agg)

    h1 = layer(h0_ref[...], w1_ref, b1_ref).astype(jnp.bfloat16)
    h2 = layer(h1, w2_ref, b2_ref).astype(jnp.bfloat16)
    h3 = layer(h2, w3_ref, b3_ref).astype(jnp.bfloat16)
    out_ref[...] = (jnp.dot(h3, wp_ref[...],
                            preferred_element_type=jnp.float32) + bp_ref[...])


def _accumulate(a_ref, h_ref, acc_ref):
    # acc += A[i, k] @ H[k];  H is VMEM-resident, sliced by the k grid index.
    k = pl.program_id(1)
    tk = a_ref.shape[1]

    @pl.when(k == 0)
    def _():
        acc_ref[...] = jnp.zeros_like(acc_ref)

    start = pl.multiple_of(k * tk, 128)
    h_blk = h_ref[pl.ds(start, tk), :]
    acc_ref[...] += jnp.dot(a_ref[...], h_blk,
                            preferred_element_type=jnp.float32)


def gcn_layer_kernel(a_ref, h_ref, w_ref, b_ref, out_ref, acc_ref):
    _accumulate(a_ref, h_ref, acc_ref)

    @pl.when(pl.program_id(1) == pl.num_programs(1) - 1)
    def _():
        # (A @ H) @ W  ==  A @ (H @ W); W applied once in the epilogue.
        agg = jnp.dot(acc_ref[...].astype(jnp.bfloat16), w_ref[...],
                      preferred_element_type=jnp.float32) + b_ref[...]
        out_ref[...] = _norm_relu(agg).astype(out_ref.dtype)


def gcn_final_kernel(a_ref, h_ref, w_ref, b_ref, wp_ref, bp_ref,
                     out_ref, acc_ref):
    _accumulate(a_ref, h_ref, acc_ref)

    @pl.when(pl.program_id(1) == pl.num_programs(1) - 1)
    def _():
        agg = jnp.dot(acc_ref[...].astype(jnp.bfloat16), w_ref[...],
                      preferred_element_type=jnp.float32) + b_ref[...]
        h3 = _norm_relu(agg).astype(jnp.bfloat16)
        # Both Linear heads fused into one lane-dense (tm, 128) store.
        out_ref[...] = (jnp.dot(h3, wp_ref[...],
                                preferred_element_type=jnp.float32)
                        + bp_ref[...])


# --------------------------- pallas_call wrappers ----------------------------

def _fused_call(a, h0, w1, b1, w2, b2, w3, b3, wp, bp, vmem_limit):
    npad = a.shape[0]
    vmem_spec = pl.BlockSpec(memory_space=pltpu.MemorySpace.VMEM)
    return pl.pallas_call(
        gcn_fused_kernel,
        out_shape=jax.ShapeDtypeStruct((npad, HEAD_WIDTH), jnp.float32),
        in_specs=[vmem_spec] * 10,
        out_specs=vmem_spec,
        compiler_params=pltpu.CompilerParams(vmem_limit_bytes=vmem_limit),
    )(a, h0, w1, b1, w2, b2, w3, b3, wp, bp)


def _layer_call(a, h, w, b, tm, tk, vmem_limit):
    npad = a.shape[0]
    f_in = h.shape[1]
    e = w.shape[1]
    grid = (npad // tm, npad // tk)
    cost = pl.CostEstimate(
        flops=int(2 * npad * npad * f_in + 2 * npad * f_in * e),
        transcendentals=int(npad),
        bytes_accessed=int(npad * npad * 2 + npad * f_in * 2
                           + f_in * e * 2 + e * 4 + npad * e * 2),
    )
    return pl.pallas_call(
        gcn_layer_kernel,
        out_shape=jax.ShapeDtypeStruct((npad, e), jnp.bfloat16),
        grid_spec=pltpu.PrefetchScalarGridSpec(
            num_scalar_prefetch=0,
            grid=grid,
            in_specs=[
                pl.BlockSpec((tm, tk), lambda i, k: (i, k)),       # A_hat (bf16)
                pl.BlockSpec((npad, f_in), lambda i, k: (0, 0)),   # H (resident)
                pl.BlockSpec((f_in, e), lambda i, k: (0, 0)),      # W (bf16)
                pl.BlockSpec((1, e), lambda i, k: (0, 0)),         # bias (f32)
            ],
            out_specs=pl.BlockSpec((tm, e), lambda i, k: (i, 0)),
            scratch_shapes=[pltpu.VMEM((tm, f_in), jnp.float32)],
        ),
        compiler_params=pltpu.CompilerParams(
            dimension_semantics=("parallel", "arbitrary"),
            vmem_limit_bytes=vmem_limit,
        ),
        cost_estimate=cost,
    )(a, h, w, b)


def _final_call(a, h, w, b, wp, bp, tm, tk, vmem_limit):
    npad = a.shape[0]
    f_in = h.shape[1]
    e = w.shape[1]
    width = wp.shape[1]
    grid = (npad // tm, npad // tk)
    cost = pl.CostEstimate(
        flops=int(2 * npad * npad * f_in + 2 * npad * f_in * e
                  + 2 * npad * e * width),
        transcendentals=int(npad),
        bytes_accessed=int(npad * npad * 2 + npad * f_in * 2
                           + f_in * e * 2 + e * width * 2
                           + npad * width * 4),
    )
    return pl.pallas_call(
        gcn_final_kernel,
        out_shape=jax.ShapeDtypeStruct((npad, width), jnp.float32),
        grid_spec=pltpu.PrefetchScalarGridSpec(
            num_scalar_prefetch=0,
            grid=grid,
            in_specs=[
                pl.BlockSpec((tm, tk), lambda i, k: (i, k)),       # A_hat (bf16)
                pl.BlockSpec((npad, f_in), lambda i, k: (0, 0)),   # H (resident)
                pl.BlockSpec((f_in, e), lambda i, k: (0, 0)),      # W3 (bf16)
                pl.BlockSpec((1, e), lambda i, k: (0, 0)),         # b3 (f32)
                pl.BlockSpec((e, width), lambda i, k: (0, 0)),     # packed W (bf16)
                pl.BlockSpec((1, width), lambda i, k: (0, 0)),     # packed b (f32)
            ],
            out_specs=pl.BlockSpec((tm, width), lambda i, k: (i, 0)),
            scratch_shapes=[pltpu.VMEM((tm, f_in), jnp.float32)],
        ),
        compiler_params=pltpu.CompilerParams(
            dimension_semantics=("parallel", "arbitrary"),
            vmem_limit_bytes=vmem_limit,
        ),
        cost_estimate=cost,
    )(a, h, w, b, wp, bp)


# ------------------------------- glue (JAX) ---------------------------------

def gcn_norm_dense(edge_index, edge_weight, num_nodes, padded_nodes):
    """Dense D^{-1/2}(A + I)D^{-1/2} (add_remaining_self_loops semantics).

    out[dst] += norm * x[src]  =>  A[dst, src].  Scattered directly into a
    bf16 buffer; padded rows/cols stay exactly zero (they must never
    contaminate real rows when padded H rows become nonzero after the bias).
    """
    src, dst = edge_index[0], edge_index[1]
    w = edge_weight.astype(jnp.float32)
    # Only add a self-loop where the node does not already have one.
    loop_edges = (src == dst).astype(jnp.float32)
    has_self = jnp.zeros(num_nodes, jnp.float32).at[dst].add(loop_edges) > 0
    loop_w = jnp.where(has_self, 0.0, 1.0)

    src_all = jnp.concatenate([src, jnp.arange(num_nodes)])
    dst_all = jnp.concatenate([dst, jnp.arange(num_nodes)])
    w_all = jnp.concatenate([w, loop_w])

    deg = jnp.zeros(num_nodes, jnp.float32).at[dst_all].add(w_all)
    dinv = jnp.where(deg > 0, jax.lax.rsqrt(deg), 0.0)
    norm = dinv[src_all] * w_all * dinv[dst_all]

    a = jnp.zeros((padded_nodes, padded_nodes), jnp.bfloat16)
    return a.at[dst_all, src_all].add(norm.astype(jnp.bfloat16))


def _pack_head(w_lin, b_lin, w_lin2, b_lin2, width=HEAD_WIDTH):
    """Fold lin and lin2 into one lane-dense (E, width) affine map."""
    e, c = w_lin.shape
    wp = jnp.zeros((e, width), jnp.float32)
    wp = wp.at[:, :c].set(w_lin)
    wp = wp.at[:, c:c + 1].set(w_lin @ w_lin2)
    bp = jnp.zeros((1, width), jnp.float32)
    bp = bp.at[:, :c].set(b_lin)
    bp = bp.at[:, c:c + 1].set(b_lin @ w_lin2 + b_lin2)
    return wp, bp


def init_params(key, num_features, num_classes, embedding_size=20):
    ks = jax.random.split(key, 6)

    def glorot(k, shape):
        lim = jnp.sqrt(6.0 / (shape[0] + shape[1]))
        return jax.random.uniform(k, shape, jnp.float32, -lim, lim)

    return {
        "w1": glorot(ks[0], (num_features, embedding_size)),
        "b1": jnp.zeros((1, embedding_size), jnp.float32),
        "w2": glorot(ks[1], (embedding_size, embedding_size)),
        "b2": jnp.zeros((1, embedding_size), jnp.float32),
        "w3": glorot(ks[2], (embedding_size, embedding_size)),
        "b3": jnp.zeros((1, embedding_size), jnp.float32),
        "w_lin": glorot(ks[3], (embedding_size, num_classes)),
        "b_lin": 0.01 * jax.random.normal(ks[4], (1, num_classes), jnp.float32),
        "w_lin2": glorot(ks[5], (num_classes, 1)),
        "b_lin2": jnp.zeros((1, 1), jnp.float32),
    }


def graph_gcn2_forward(x, edge_index, params, edge_weights=None,
                       force_stream=False):
    n, f = x.shape
    c = params["w_lin"].shape[1]
    if edge_weights is None:
        edge_weights = jnp.ones(edge_index.shape[1], dtype=jnp.float32)

    npad = _round_up(n, 128)
    vmem_cap = _vmem_capacity_bytes()

    a_hat = gcn_norm_dense(edge_index, edge_weights, n, npad)              # bf16
    h0 = jnp.zeros((npad, f), jnp.float32).at[:n].set(x).astype(jnp.bfloat16)

    w1 = params["w1"].astype(jnp.bfloat16)
    w2 = params["w2"].astype(jnp.bfloat16)
    w3 = params["w3"].astype(jnp.bfloat16)
    b1, b2, b3 = params["b1"], params["b2"], params["b3"]
    wp, bp = _pack_head(params["w_lin"], params["b_lin"],
                        params["w_lin2"], params["b_lin2"])
    wp = wp.astype(jnp.bfloat16)

    if _fused_fits(npad, vmem_cap) and not force_stream:
        packed = _fused_call(a_hat, h0, w1, b1, w2, b2, w3, b3, wp, bp,
                             _fused_vmem_limit(npad, vmem_cap))
    else:
        tm, tk = _choose_stream_tiles(npad, vmem_cap)
        vlim = _stream_vmem_limit(npad, tm, tk, vmem_cap)
        h1 = _layer_call(a_hat, h0, w1, b1, tm, tk, vlim)
        h2 = _layer_call(a_hat, h1, w2, b2, tm, tk, vlim)
        packed = _final_call(a_hat, h2, w3, b3, wp, bp, tm, tk, vlim)

    input_lin = packed[:n, :c]
    out = packed[:n, c:c + 1]
    return out, input_lin


# ------------------------------ f32 reference --------------------------------

def _reference_forward(a_hat_bf16, x, params, n):
    a = a_hat_bf16[:n, :n].astype(jnp.float32)

    def layer(h, w, b):
        agg = a @ (h @ w) + b
        nrm = jnp.sqrt(jnp.sum(agg * agg, axis=1, keepdims=True))
        h_out = agg / jnp.maximum(nrm, EPS)
        return jnp.maximum(h_out, 0.0)

    h1 = layer(x, params["w1"], params["b1"])
    h2 = layer(h1, params["w2"], params["b2"])
    h3 = layer(h2, params["w3"], params["b3"])
    input_lin = h3 @ params["w_lin"] + params["b_lin"]
    out = input_lin @ params["w_lin2"] + params["b_lin2"]
    return out, input_lin


# --------------------------------- main --------------------------------------

if __name__ == "__main__":
    key = jax.random.PRNGKey(0)
    k_x, k_p = jax.random.split(key)

    num_features = 8
    num_classes = 4
    params = init_params(k_p, num_features, num_classes)

    fwd = jax.jit(graph_gcn2_forward, static_argnames=("force_stream",))

    def ring_graph(n):
        idx = jnp.arange(n)
        src = jnp.concatenate([idx, (idx + 1) % n])
        dst = jnp.concatenate([(idx + 1) % n, idx])
        return jnp.stack([src, dst], axis=0)

    def check(n, force_stream):
        x = jax.random.normal(k_x, (n, num_features), jnp.float32)
        edge_index = ring_graph(n)
        out, input_lin = fwd(x, edge_index, params, force_stream=force_stream)
        jax.block_until_ready((out, input_lin))
        assert out.shape == (n, 1)
        assert input_lin.shape == (n, num_classes)
        assert bool(jnp.all(jnp.isfinite(out)))
        assert bool(jnp.all(jnp.isfinite(input_lin)))
        a_hat = gcn_norm_dense(edge_index,
                               jnp.ones(edge_index.shape[1], jnp.float32),
                               n, _round_up(n, 128))
        ref_out, ref_lin = _reference_forward(a_hat, x, params, n)
        err = max(float(jnp.max(jnp.abs(out - ref_out))),
                  float(jnp.max(jnp.abs(input_lin - ref_lin))))
        assert err < 5e-2, f"max abs error {err} (n={n}, stream={force_stream})"

    check(16, force_stream=False)    # fused path (A_hat resident in VMEM)
    check(200, force_stream=True)    # streamed path (tiled A, resident H)
    print("KERNEL_OK")
</pallas_src>

<mosaic_0001>
module attributes {stable_mosaic.version = 11 : i64} {
  func.func @gcn_fused_kernel(%arg0: memref<128x128xbf16, #tpu.memory_space<vmem>>, %arg1: memref<128x8xbf16, #tpu.memory_space<vmem>>, %arg2: memref<8x20xbf16, #tpu.memory_space<vmem>>, %arg3: memref<1x20xf32, #tpu.memory_space<vmem>>, %arg4: memref<20x20xbf16, #tpu.memory_space<vmem>>, %arg5: memref<1x20xf32, #tpu.memory_space<vmem>>, %arg6: memref<20x20xbf16, #tpu.memory_space<vmem>>, %arg7: memref<1x20xf32, #tpu.memory_space<vmem>>, %arg8: memref<20x128xbf16, #tpu.memory_space<vmem>>, %arg9: memref<1x128xf32, #tpu.memory_space<vmem>>, %arg10: memref<128x128xf32, #tpu.memory_space<vmem>>) attributes {dimension_semantics = [], scalar_prefetch = 0 : i64, scratch_operands = 0 : i64, tpu.core_type = #tpu.core_type<tc>} {
    %c0 = arith.constant 0 : index
    %c0_0 = arith.constant 0 : index
    %0 = vector.load %arg1[%c0, %c0_0] : memref<128x8xbf16, #tpu.memory_space<vmem>>, vector<128x8xbf16>
    %c0_1 = arith.constant 0 : index
    %c0_2 = arith.constant 0 : index
    %1 = vector.load %arg2[%c0_1, %c0_2] : memref<8x20xbf16, #tpu.memory_space<vmem>>, vector<8x20xbf16>
    %cst = arith.constant dense<0.000000e+00> : vector<128x20xf32>
    %2 = tpu.matmul %0, %1, %cst {dimension_numbers = #tpu.dot_dimension_numbers<[1], [0], [0], [1], [0, 0, 1, 1], [], []>} : vector<128x8xbf16>, vector<8x20xbf16>, vector<128x20xf32> -> vector<128x20xf32>
    %c0_3 = arith.constant 0 : index
    %c0_4 = arith.constant 0 : index
    %3 = vector.load %arg0[%c0_3, %c0_4] : memref<128x128xbf16, #tpu.memory_space<vmem>>, vector<128x128xbf16>
    %4 = arith.truncf %2 : vector<128x20xf32> to vector<128x20xbf16>
    %cst_5 = arith.constant dense<0.000000e+00> : vector<128x20xf32>
    %5 = tpu.matmul %3, %4, %cst_5 {dimension_numbers = #tpu.dot_dimension_numbers<[1], [0], [0], [1], [0, 0, 1, 1], [], []>} : vector<128x128xbf16>, vector<128x20xbf16>, vector<128x20xf32> -> vector<128x20xf32>
    %c0_6 = arith.constant 0 : index
    %c0_7 = arith.constant 0 : index
    %6 = vector.load %arg3[%c0_6, %c0_7] : memref<1x20xf32, #tpu.memory_space<vmem>>, vector<1x20xf32>
    %7 = vector.broadcast %6 : vector<1x20xf32> to vector<128x20xf32>
    %8 = arith.addf %5, %7 : vector<128x20xf32>
    %9 = arith.mulf %8, %8 : vector<128x20xf32>
    %cst_8 = arith.constant dense<0.000000e+00> : vector<128xf32>
    %10 = vector.multi_reduction <add>, %9, %cst_8 [1] : vector<128x20xf32> to vector<128xf32>
    %11 = vector.shape_cast %10 : vector<128xf32> to vector<128x1xf32>
    %cst_9 = arith.constant 1.000000e-24 : f32
    %12 = vector.broadcast %cst_9 : f32 to vector<128x1xf32>
    %13 = arith.maximumf %11, %12 : vector<128x1xf32>
    %14 = math.rsqrt %13 : vector<128x1xf32>
    %15 = vector.broadcast %14 : vector<128x1xf32> to vector<128x20xf32>
    %16 = arith.mulf %8, %15 : vector<128x20xf32>
    %cst_10 = arith.constant 0.000000e+00 : f32
    %17 = vector.broadcast %cst_10 : f32 to vector<128x20xf32>
    %18 = arith.maximumf %16, %17 : vector<128x20xf32>
    %19 = arith.truncf %18 : vector<128x20xf32> to vector<128x20xbf16>
    %c0_11 = arith.constant 0 : index
    %c0_12 = arith.constant 0 : index
    %20 = vector.load %arg4[%c0_11, %c0_12] : memref<20x20xbf16, #tpu.memory_space<vmem>>, vector<20x20xbf16>
    %cst_13 = arith.constant dense<0.000000e+00> : vector<128x20xf32>
    %21 = tpu.matmul %19, %20, %cst_13 {dimension_numbers = #tpu.dot_dimension_numbers<[1], [0], [0], [1], [0, 0, 1, 1], [], []>} : vector<128x20xbf16>, vector<20x20xbf16>, vector<128x20xf32> -> vector<128x20xf32>
    %c0_14 = arith.constant 0 : index
    %c0_15 = arith.constant 0 : index
    %22 = vector.load %arg0[%c0_14, %c0_15] : memref<128x128xbf16, #tpu.memory_space<vmem>>, vector<128x128xbf16>
    %23 = arith.truncf %21 : vector<128x20xf32> to vector<128x20xbf16>
    %cst_16 = arith.constant dense<0.000000e+00> : vector<128x20xf32>
    %24 = tpu.matmul %22, %23, %cst_16 {dimension_numbers = #tpu.dot_dimension_numbers<[1], [0], [0], [1], [0, 0, 1, 1], [], []>} : vector<128x128xbf16>, vector<128x20xbf16>, vector<128x20xf32> -> vector<128x20xf32>
    %c0_17 = arith.constant 0 : index
    %c0_18 = arith.constant 0 : index
    %25 = vector.load %arg5[%c0_17, %c0_18] : memref<1x20xf32, #tpu.memory_space<vmem>>, vector<1x20xf32>
    %26 = vector.broadcast %25 : vector<1x20xf32> to vector<128x20xf32>
    %27 = arith.addf %24, %26 : vector<128x20xf32>
    %28 = arith.mulf %27, %27 : vector<128x20xf32>
    %cst_19 = arith.constant dense<0.000000e+00> : vector<128xf32>
    %29 = vector.multi_reduction <add>, %28, %cst_19 [1] : vector<128x20xf32> to vector<128xf32>
    %30 = vector.shape_cast %29 : vector<128xf32> to vector<128x1xf32>
    %cst_20 = arith.constant 1.000000e-24 : f32
    %31 = vector.broadcast %cst_20 : f32 to vector<128x1xf32>
    %32 = arith.maximumf %30, %31 : vector<128x1xf32>
    %33 = math.rsqrt %32 : vector<128x1xf32>
    %34 = vector.broadcast %33 : vector<128x1xf32> to vector<128x20xf32>
    %35 = arith.mulf %27, %34 : vector<128x20xf32>
    %cst_21 = arith.constant 0.000000e+00 : f32
    %36 = vector.broadcast %cst_21 : f32 to vector<128x20xf32>
    %37 = arith.maximumf %35, %36 : vector<128x20xf32>
    %38 = arith.truncf %37 : vector<128x20xf32> to vector<128x20xbf16>
    %c0_22 = arith.constant 0 : index
    %c0_23 = arith.constant 0 : index
    %39 = vector.load %arg6[%c0_22, %c0_23] : memref<20x20xbf16, #tpu.memory_space<vmem>>, vector<20x20xbf16>
    %cst_24 = arith.constant dense<0.000000e+00> : vector<128x20xf32>
    %40 = tpu.matmul %38, %39, %cst_24 {dimension_numbers = #tpu.dot_dimension_numbers<[1], [0], [0], [1], [0, 0, 1, 1], [], []>} : vector<128x20xbf16>, vector<20x20xbf16>, vector<128x20xf32> -> vector<128x20xf32>
    %c0_25 = arith.constant 0 : index
    %c0_26 = arith.constant 0 : index
    %41 = vector.load %arg0[%c0_25, %c0_26] : memref<128x128xbf16, #tpu.memory_space<vmem>>, vector<128x128xbf16>
    %42 = arith.truncf %40 : vector<128x20xf32> to vector<128x20xbf16>
    %cst_27 = arith.constant dense<0.000000e+00> : vector<128x20xf32>
    %43 = tpu.matmul %41, %42, %cst_27 {dimension_numbers = #tpu.dot_dimension_numbers<[1], [0], [0], [1], [0, 0, 1, 1], [], []>} : vector<128x128xbf16>, vector<128x20xbf16>, vector<128x20xf32> -> vector<128x20xf32>
    %c0_28 = arith.constant 0 : index
    %c0_29 = arith.constant 0 : index
    %44 = vector.load %arg7[%c0_28, %c0_29] : memref<1x20xf32, #tpu.memory_space<vmem>>, vector<1x20xf32>
    %45 = vector.broadcast %44 : vector<1x20xf32> to vector<128x20xf32>
    %46 = arith.addf %43, %45 : vector<128x20xf32>
    %47 = arith.mulf %46, %46 : vector<128x20xf32>
    %cst_30 = arith.constant dense<0.000000e+00> : vector<128xf32>
    %48 = vector.multi_reduction <add>, %47, %cst_30 [1] : vector<128x20xf32> to vector<128xf32>
    %49 = vector.shape_cast %48 : vector<128xf32> to vector<128x1xf32>
    %cst_31 = arith.constant 1.000000e-24 : f32
    %50 = vector.broadcast %cst_31 : f32 to vector<128x1xf32>
    %51 = arith.maximumf %49, %50 : vector<128x1xf32>
    %52 = math.rsqrt %51 : vector<128x1xf32>
    %53 = vector.broadcast %52 : vector<128x1xf32> to vector<128x20xf32>
    %54 = arith.mulf %46, %53 : vector<128x20xf32>
    %cst_32 = arith.constant 0.000000e+00 : f32
    %55 = vector.broadcast %cst_32 : f32 to vector<128x20xf32>
    %56 = arith.maximumf %54, %55 : vector<128x20xf32>
    %57 = arith.truncf %56 : vector<128x20xf32> to vector<128x20xbf16>
    %c0_33 = arith.constant 0 : index
    %c0_34 = arith.constant 0 : index
    %58 = vector.load %arg8[%c0_33, %c0_34] : memref<20x128xbf16, #tpu.memory_space<vmem>>, vector<20x128xbf16>
    %cst_35 = arith.constant dense<0.000000e+00> : vector<128x128xf32>
    %59 = tpu.matmul %57, %58, %cst_35 {dimension_numbers = #tpu.dot_dimension_numbers<[1], [0], [0], [1], [0, 0, 1, 1], [], []>} : vector<128x20xbf16>, vector<20x128xbf16>, vector<128x128xf32> -> vector<128x128xf32>
    %c0_36 = arith.constant 0 : index
    %c0_37 = arith.constant 0 : index
    %60 = vector.load %arg9[%c0_36, %c0_37] : memref<1x128xf32, #tpu.memory_space<vmem>>, vector<1x128xf32>
    %61 = vector.broadcast %60 : vector<1x128xf32> to vector<128x128xf32>
    %62 = arith.addf %59, %61 : vector<128x128xf32>
    %c0_38 = arith.constant 0 : index
    %c0_39 = arith.constant 0 : index
    %63 = vector.load %arg10[%c0_38, %c0_39] : memref<128x128xf32, #tpu.memory_space<vmem>>, vector<128x128xf32>
    tpu.vector_store %arg10[%c0_38, %c0_39], %62 {strides = array<i32>} : memref<128x128xf32, #tpu.memory_space<vmem>>, vector<128x128xf32>,
    return
  }
}

</mosaic_0001>

<bundles_post_ra>
// kernel: graph_gcn2_forward.1
= control target key start
LH: loop header
LB: loop body
LE: loop exit
PB: predicated region body
PF: predicated region fallthrough
CT: control target
= control target key end

     0   :  { %vm118_vm0 = vcmask 1043456   ;;  %vm93_vm1 = vcmask 64512   ;;  %vm312_vm2 = vcmask 162816   ;;  %vm613_vm3 = vcmask 1041408   ;;  %s2429_s2 = inlined_call_operand.vmem [shape: bf16[8,20], index: 2, kind: input, shape index: {}]   ;;  %s2430_s1 = inlined_call_operand.vmem [shape: bf16[128,8], index: 1, kind: input, shape index: {}]   ;;  %s2431_s3 = inlined_call_operand.vmem [shape: f32[1,20], index: 3, kind: input, shape index: {}]   ;;  %s2432_s0 = inlined_call_operand.vmem [shape: bf16[128,128], index: 0, kind: input, shape index: {}]   ;;  %s2433_s4 = inlined_call_operand.vmem [shape: bf16[20,20], index: 4, kind: input, shape index: {}]   ;;  %s2434_s5 = inlined_call_operand.vmem [shape: f32[1,20], index: 5, kind: input, shape index: {}]   ;;  %s2435_s6 = inlined_call_operand.vmem [shape: bf16[20,20], index: 6, kind: input, shape index: {}]   ;;  %s2436_s7 = inlined_call_operand.vmem [shape: f32[1,20], index: 7, kind: input, shape index: {}]   ;;  %s2437_s8 = inlined_call_operand.vmem [shape: bf16[20,128], index: 8, kind: input, shape index: {}]   ;;  %s2438_s9 = inlined_call_operand.vmem [shape: f32[1,128], index: 9, kind: input, shape index: {}]   ;;  %s2439_s10 = inlined_call_operand.vmem [shape: f32[128,128], index: 10, kind: output, shape index: {}]  }
   0x1   :  { %v52_v0 = vld [vmem:[%s2429_s2] sm:$0xf]  ;;  %v1657_v3 = vld [vmem:[%s2430_s1 + $0x8] sm:$0xff]  ;;  %v1658_v4 = vld [vmem:[%s2430_s1 + $0x10] sm:$0xff] }
   0x2   :  { %v120_v1 = vsel %vm118_vm0, %v52_v0, 0  ;;  %v1656_v2 = vld [vmem:[%s2430_s1] sm:$0xff]  ;;  %v1659_v5 = vld [vmem:[%s2430_s1 + $0x18] sm:$0xff]  ;;  %v1661_v7 = vld [vmem:[%s2430_s1 + $0x28] sm:$0xff] }
   0x3   :  { %129 = vmatpush.bf16.msra.mxu0 %v120_v1  ;;  %v1660_v6 = vld [vmem:[%s2430_s1 + $0x20] sm:$0xff]  ;;  %v1662_v8 = vld [vmem:[%s2430_s1 + $0x30] sm:$0xff]  ;;  %v1663_v9 = vld [vmem:[%s2430_s1 + $0x38] sm:$0xff] }
   0x4   :  { %v1884_v34 = vld [vmem:[%s2432_s0] sm:$0xff]  ;;  %v1890_v35 = vld [vmem:[%s2432_s0 + $0x8] sm:$0xff]  ;;  %v1896_v36 = vld [vmem:[%s2432_s0 + $0x30] sm:$0xff] }
   0x5   :  { %v1902_v37 = vld [vmem:[%s2432_s0 + $0x10] sm:$0xff]  ;;  %v1908_v38 = vld [vmem:[%s2432_s0 + $0x38] sm:$0xff]  ;;  %v1920_v40 = vld [vmem:[%s2432_s0 + $0x20] sm:$0xff] }
   0x6   :  { %1580 = vmatmul.msk.bf16.vlgmr.msra.gmra.mxu0 %vm93_vm1, %v1656_v2  ;;  %v1914_v39 = vld [vmem:[%s2432_s0 + $0x18] sm:$0xff]  ;;  %v1926_v41 = vld [vmem:[%s2432_s0 + $0x28] sm:$0xff]  ;;  %v1932_v42 = vld [vmem:[%s2431_s3] ss:$0 sm:$0xff] }
  0x16   :  { %1581 = vmatmul.msk.bf16.gmra.mxu0 %vm93_vm1, %v1657_v3 }
  0x26   :  { %1582 = vmatmul.msk.bf16.gmra.mxu0 %vm93_vm1, %v1658_v4 }
  0x36   :  { %1583 = vmatmul.msk.bf16.gmra.mxu0 %vm93_vm1, %v1659_v5 }
  0x46   :  { %1584 = vmatmul.msk.bf16.gmra.mxu0 %vm93_vm1, %v1660_v6 }
  0x56   :  { %1585 = vmatmul.msk.bf16.gmra.mxu0 %vm93_vm1, %v1661_v7 }
  0x66   :  { %1586 = vmatmul.msk.bf16.gmra.mxu0 %vm93_vm1, %v1662_v8 }
  0x76   :  { %1587 = vmatmul.msk.bf16.gmra.mxu0 %vm93_vm1, %v1663_v9 }
  0x83   :  { %v131_v10 = vpop.f32.mrf.mxu0 }
  0x8b   :  { %v133_v11 = vpop.f32.mrf.mxu0 }
  0x8c   :  { %v187_v33 = vpack.c.bf16 %v133_v11, %v131_v10 }
  0x93   :  { %v136_v12 = vpop.f32.mrf.mxu0 }
  0x9b   :  { %v138_v13 = vpop.f32.mrf.mxu0 }
  0x9c   :  { %v188_v32 = vpack.c.bf16 %v138_v13, %v136_v12 }
  0xa3   :  { %v141_v14 = vpop.f32.mrf.mxu0 }
  0xab   :  { %v143_v15 = vpop.f32.mrf.mxu0 }
  0xac   :  { %v189_v31 = vpack.c.bf16 %v143_v15, %v141_v14 }
  0xb3   :  { %v146_v16 = vpop.f32.mrf.mxu0 }
  0xbb   :  { %v148_v17 = vpop.f32.mrf.mxu0 }
  0xbc   :  { %v190_v30 = vpack.c.bf16 %v148_v17, %v146_v16 }
  0xc3   :  { %v151_v18 = vpop.f32.mrf.mxu0 }
  0xcb   :  { %v153_v19 = vpop.f32.mrf.mxu0 }
  0xcc   :  { %v191_v29 = vpack.c.bf16 %v153_v19, %v151_v18 }
  0xd3   :  { %v156_v20 = vpop.f32.mrf.mxu0 }
  0xdb   :  { %v158_v21 = vpop.f32.mrf.mxu0 }
  0xdc   :  { %v192_v28 = vpack.c.bf16 %v158_v21, %v156_v20 }
  0xe3   :  { %v161_v22 = vpop.f32.mrf.mxu0 }
  0xeb   :  { %v163_v23 = vpop.f32.mrf.mxu0 }
  0xec   :  { %v193_v27 = vpack.c.bf16 %v163_v23, %v161_v22 }
  0xf3   :  { %v166_v24 = vpop.f32.mrf.mxu0 }
  0xfb   :  { %v168_v25 = vpop.f32.mrf.mxu0 }
  0xfc   :  { %v194_v26 = vpack.c.bf16 %v168_v25, %v166_v24 }
  0xfe   :  { %247 = vmatpush.bf16.msra.mxu1 %v194_v26  ;;  %1675 = vmatpush.bf16.msra.mxu3 %v194_v26 }
 0x102   :  { %248 = vmatpush.bf16.msra.mxu1 %v193_v27  ;;  %1676 = vmatpush.bf16.msra.mxu3 %v193_v27 }
 0x106   :  { %249 = vmatpush.bf16.msra.mxu1 %v192_v28  ;;  %1677 = vmatpush.bf16.msra.mxu3 %v192_v28 }
 0x10a   :  { %250 = vmatpush.bf16.msra.mxu1 %v191_v29  ;;  %1678 = vmatpush.bf16.msra.mxu3 %v191_v29 }
 0x10e   :  { %251 = vmatpush.bf16.msra.mxu1 %v190_v30  ;;  %1679 = vmatpush.bf16.msra.mxu3 %v190_v30 }
 0x112   :  { %252 = vmatpush.bf16.msra.mxu1 %v189_v31  ;;  %1680 = vmatpush.bf16.msra.mxu3 %v189_v31 }
 0x116   :  { %253 = vmatpush.bf16.msra.mxu1 %v188_v32  ;;  %1681 = vmatpush.bf16.msra.mxu3 %v188_v32 }
 0x11a   :  { %254 = vmatpush.bf16.msra.mxu1 %v187_v33  ;;  %1682 = vmatpush.bf16.msra.mxu3 %v187_v33 }
 0x11d   :  { %255 = vmatmul.bf16.vlgmr.msra.gmra.mxu1 %v1884_v34  ;;  %285 = vmatmul.bf16.vlgmr.msra.gmra.mxu3 %v1896_v36 }
 0x12d   :  { %260 = vmatmul.bf16.gmra.mxu1 %v1890_v35  ;;  %290 = vmatmul.bf16.gmra.mxu3 %v1908_v38 }
 0x13d   :  { %265 = vmatmul.bf16.gmra.mxu1 %v1902_v37 }
 0x14d   :  { %270 = vmatmul.bf16.gmra.mxu1 %v1914_v39 }
 0x15d   :  { %275 = vmatmul.bf16.gmra.mxu1 %v1920_v40 }
 0x16d   :  { %280 = vmatmul.bf16.gmra.mxu1 %v1926_v41 }
 0x19a   :  { %v256_v43 = vpop.f32.mrf.mxu1 }
 0x19b   :  { %v1935_v44 = vadd.f32 %v1932_v42, %v256_v43 }
 0x19d   :  { %v296_v45 = vmul.f32 %v1935_v44, %v1935_v44 }
 0x19f   :  { %v313_v46 = vsel %vm312_vm2, %v296_v45, 0.0 }
 0x1a0   :  { %314 = vadd.xlane.f32.xlu0 %v313_v46  ;;  %v286_v6 = vpop.f32.mrf.mxu3 }
 0x1a1   :  { %v1992_v20 = vadd.f32 %v1932_v42, %v286_v6 }
 0x1a2   :  { %v258_v47 = vpop.f32.mrf.mxu1 }
 0x1a3   :  { %v1941_v48 = vadd.f32 %v1932_v42, %v258_v47  ;;  %v308_v23 = vmul.f32 %v1992_v20, %v1992_v20 }
 0x1a5   :  { %v297_v49 = vmul.f32 %v1941_v48, %v1941_v48  ;;  %v349_v29 = vsel %vm312_vm2, %v308_v23, 0.0 }
 0x1a7   :  { %v316_v50 = vsel %vm312_vm2, %v297_v49, 0.0 }
 0x1a8   :  { %317 = vadd.xlane.f32.xlu0 %v316_v50  ;;  %v288_v12 = vpop.f32.mrf.mxu3 }
 0x1a9   :  { %v2003_v27 = vadd.f32 %v1932_v42, %v288_v12 }
 0x1aa   :  { %v261_v51 = vpop.f32.mrf.mxu1 }
 0x1ab   :  { %v1947_v52 = vadd.f32 %v1932_v42, %v261_v51  ;;  %v309_v32 = vmul.f32 %v2003_v27, %v2003_v27 }
 0x1ad   :  { %v298_v53 = vmul.f32 %v1947_v52, %v1947_v52  ;;  %v352_v49 = vsel %vm312_vm2, %v309_v32, 0.0 }
 0x1af   :  { %v319_v54 = vsel %vm312_vm2, %v298_v53, 0.0 }
 0x1b0   :  { %320 = vadd.xlane.f32.xlu1 %v319_v54  ;;  %v291_v17 = vpop.f32.mrf.mxu3 }
 0x1b1   :  { %v2020_v46 = vadd.f32 %v1932_v42, %v291_v17 }
 0x1b2   :  { %v263_v55 = vpop.f32.mrf.mxu1 }
 0x1b3   :  { %v1953_v56 = vadd.f32 %v1932_v42, %v263_v55  ;;  %v310_v53 = vmul.f32 %v2020_v46, %v2020_v46 }
 0x1b5   :  { %v299_v57 = vmul.f32 %v1953_v56, %v1953_v56  ;;  %v355_v54 = vsel %vm312_vm2, %v310_v53, 0.0 }
 0x1b7   :  { %v322_v58 = vsel %vm312_vm2, %v299_v57, 0.0 }
 0x1b8   :  { %323 = vadd.xlane.f32.xlu1 %v322_v58  ;;  %v293_v26 = vpop.f32.mrf.mxu3 }
 0x1b9   :  { %v2009_v30 = vadd.f32 %v1932_v42, %v293_v26 }
 0x1ba   :  { %v266_v59 = vpop.f32.mrf.mxu1 }
 0x1bb   :  { %v1959_v60 = vadd.f32 %v1932_v42, %v266_v59  ;;  %v311_v43 = vmul.f32 %v2009_v30, %v2009_v30  ;;  %v1672_v59 = vld [vmem:[%s2433_s4] sm:$0xff] }
 0x1bd   :  { %v300_v61 = vmul.f32 %v1959_v60, %v1959_v60  ;;  %v358_v50 = vsel %vm312_vm2, %v311_v43, 0.0 }
 0x1bf   :  { %v325_v62 = vsel %vm312_vm2, %v300_v61, 0.0 }
 0x1c0   :  { %326 = vadd.xlane.f32.xlu2 %v325_v62 }
 0x1c2   :  { %v268_v63 = vpop.f32.mrf.mxu1 }
 0x1c3   :  { %v1965_v0 = vadd.f32 %v1932_v42, %v268_v63 }
 0x1c5   :  { %v301_v1 = vmul.f32 %v1965_v0, %v1965_v0 }
 0x1c7   :  { %v328_v2 = vsel %vm312_vm2, %v301_v1, 0.0 }
 0x1c8   :  { %329 = vadd.xlane.f32.xlu2 %v328_v2 }
 0x1ca   :  { %v271_v3 = vpop.f32.mrf.mxu1 }
 0x1cb   :  { %v1971_v4 = vadd.f32 %v1932_v42, %v271_v3 }
 0x1cd   :  { %v302_v5 = vmul.f32 %v1971_v4, %v1971_v4 }
 0x1cf   :  { %v331_v7 = vsel %vm312_vm2, %v302_v5, 0.0 }
 0x1d0   :  { %332 = vadd.xlane.f32.xlu0 %v331_v7 }
 0x1d2   :  { %v273_v8 = vpop.f32.mrf.mxu1 }
 0x1d3   :  { %v1977_v9 = vadd.f32 %v1932_v42, %v273_v8 }
 0x1d5   :  { %v303_v10 = vmul.f32 %v1977_v9, %v1977_v9 }
 0x1d7   :  { %v334_v11 = vsel %vm312_vm2, %v303_v10, 0.0 }
 0x1d8   :  { %335 = vadd.xlane.f32.xlu1 %v334_v11 }
 0x1da   :  { %v276_v13 = vpop.f32.mrf.mxu1 }
 0x1db   :  { %v1983_v14 = vadd.f32 %v1932_v42, %v276_v13 }
 0x1dd   :  { %v304_v15 = vmul.f32 %v1983_v14, %v1983_v14 }
 0x1df   :  { %v337_v16 = vsel %vm312_vm2, %v304_v15, 0.0 }
 0x1e0   :  { %338 = vadd.xlane.f32.xlu2 %v337_v16 }
 0x1e2   :  { %v278_v18 = vpop.f32.mrf.mxu1 }
 0x1e3   :  { %v1989_v19 = vadd.f32 %v1932_v42, %v278_v18 }
 0x1e5   :  { %v305_v21 = vmul.f32 %v1989_v19, %v1989_v19 }
 0x1e7   :  { %v340_v22 = vsel %vm312_vm2, %v305_v21, 0.0 }
 0x1e8   :  { %341 = vadd.xlane.f32.xlu0 %v340_v22 }
 0x1ea   :  { %v281_v24 = vpop.f32.mrf.mxu1 }
 0x1eb   :  { %v2000_v25 = vadd.f32 %v1932_v42, %v281_v24 }
 0x1ed   :  { %v306_v28 = vmul.f32 %v2000_v25, %v2000_v25 }
 0x1ef   :  { %v343_v31 = vsel %vm312_vm2, %v306_v28, 0.0 }
 0x1f0   :  { %344 = vadd.xlane.f32.xlu1 %v343_v31  ;;  %350 = vadd.xlane.f32.xlu0 %v349_v29 }
 0x1f2   :  { %v283_v33 = vpop.f32.mrf.mxu1 }
 0x1f3   :  { %v2017_v45 = vadd.f32 %v1932_v42, %v283_v33  ;;  %v579_v42 = vld [vmem:[%s2433_s4 + $0x8] sm:$0x3] }
 0x1f4   :  { %v585_v55 = vunpack.c.l.b16 %v579_v42 }
 0x1f5   :  { %v307_v47 = vmul.f32 %v2017_v45, %v2017_v45 }
 0x1f6   :  { %v587_v57 = vpack.c.b16 %v585_v55, %v585_v55 }
 0x1f7   :  { %v346_v51 = vsel %vm312_vm2, %v307_v47, 0.0 }
 0x1f8   :  { %347 = vadd.xlane.f32.xlu2 %v346_v51  ;;  %353 = vadd.xlane.f32.xlu1 %v352_v49  ;;  %v615_v58 = vsel %vm613_vm3, %v587_v57, 0 }
 0x1f9   :  { %359 = vadd.xlane.f32.xlu0 %v358_v50  ;;  %623 = vmatpush.bf16.msra.mxu2 %v615_v58 }
 0x1fd   :  { %624 = vmatpush.bf16.msra.mxu2 %v1672_v59 }
 0x200   :  { %356 = vadd.xlane.f32.xlu2 %v355_v54 }
 0x213   :  { %v315_v61 = vpop.xlane.xlu0 %314 }
 0x214   :  { %v361_v62 = vmax.f32 %v315_v61, 1e-24 }
 0x216   :  { %1695 = vrsqrt.f32 %v361_v62  ;;  %vm383_vm5 = vweird.f32 %v361_v62 }
 0x21b   :  { %v318_v63 = vpop.xlane.xlu0 %317 }
 0x21c   :  { %v1696_v1 = vpop.eup %1695  ;;  %v362_v2 = vmax.f32 %v318_v63, 1e-24 }
 0x21d   :  { %v378_v3 = vmul.f32 %v1696_v1, %v361_v62  ;;  %vm384_vm4 = vweird.f32 %v1696_v1 }
 0x21e   :  { %1697 = vrsqrt.f32 %v362_v2  ;;  %vm385_vm6 = vmor %vm383_vm5, %vm384_vm4  ;;  %vm393_vm8 = vweird.f32 %v362_v2 }
 0x21f   :  { %v379_v5 = vmul.f32 %v1696_v1, %v378_v3 }
 0x221   :  { %v380_v6 = vmul.f32 0.5, %v379_v5 }
 0x223   :  { %v381_v7 = vsub.f32 1.5, %v380_v6  ;;  %v321_v8 = vpop.xlane.xlu1 %320 }
 0x224   :  { %v1698_v10 = vpop.eup %1697  ;;  %v363_v11 = vmax.f32 %v321_v8, 1e-24 }
 0x225   :  { %v388_v12 = vmul.f32 %v1698_v10, %v362_v2  ;;  %v382_v13 = vmul.f32 %v1696_v1, %v381_v7  ;;  %vm394_vm7 = vweird.f32 %v1698_v10 }
 0x226   :  { %1699 = vrsqrt.f32 %v363_v11  ;;  %vm395_vm9 = vmor %vm393_vm8, %vm394_vm7  ;;  %vm403_vm11 = vweird.f32 %v363_v11 }
 0x227   :  { %v389_v15 = vmul.f32 %v1698_v10, %v388_v12  ;;  %v386_v21 = vsel %vm385_vm6, %v1696_v1, %v382_v13 }
 0x228   :  { %v537_v28 = vmul.f32 %v386_v21, %v1935_v44 }
 0x229   :  { %v390_v16 = vmul.f32 0.5, %v389_v15 }
 0x22a   :  { %v553_v43 = vmax.f32 %v537_v28, 0.0 }
 0x22b   :  { %v391_v17 = vsub.f32 1.5, %v390_v16  ;;  %v324_v18 = vpop.xlane.xlu1 %323 }
 0x22c   :  { %v1700_v22 = vpop.eup %1699  ;;  %v364_v23 = vmax.f32 %v324_v18, 1e-24 }
 0x22d   :  { %v392_v24 = vmul.f32 %v1698_v10, %v391_v17  ;;  %v398_v26 = vmul.f32 %v1700_v22, %v363_v11  ;;  %vm404_vm10 = vweird.f32 %v1700_v22 }
 0x22e   :  { %1701 = vrsqrt.f32 %v364_v23  ;;  %vm405_vm12 = vmor %vm403_vm11, %vm404_vm10  ;;  %vm413_vm14 = vweird.f32 %v364_v23 }
 0x22f   :  { %v399_v29 = vmul.f32 %v1700_v22, %v398_v26  ;;  %v396_v31 = vsel %vm395_vm9, %v1698_v10, %v392_v24 }
 0x230   :  { %v538_v32 = vmul.f32 %v396_v31, %v1941_v48 }
 0x231   :  { %v400_v33 = vmul.f32 0.5, %v399_v29 }
 0x232   :  { %v554_v47 = vmax.f32 %v538_v32, 0.0 }
 0x233   :  { %v401_v49 = vsub.f32 1.5, %v400_v33  ;;  %v327_v50 = vpop.xlane.xlu2 %326 }
 0x234   :  { %v1702_v51 = vpop.eup %1701  ;;  %v365_v53 = vmax.f32 %v327_v50, 1e-24  ;;  %v569_v54 = vpack.c.bf16 %v554_v47, %v553_v43 }
 0x235   :  { %v408_v42 = vmul.f32 %v1702_v51, %v364_v23  ;;  %v402_v55 = vmul.f32 %v1700_v22, %v401_v49  ;;  %vm414_vm13 = vweird.f32 %v1702_v51 }
 0x236   :  { %1703 = vrsqrt.f32 %v365_v53  ;;  %1624 = vmatmul.msk.bf16.vlgmr.msra.gmra.mxu2 %vm312_vm2, %v569_v54  ;;  %vm415_vm15 = vmor %vm413_vm14, %vm414_vm13  ;;  %vm423_vm1 = vweird.f32 %v365_v53 }
 0x237   :  { %v409_v57 = vmul.f32 %v1702_v51, %v408_v42  ;;  %v406_v59 = vsel %vm405_vm12, %v1700_v22, %v402_v55 }
 0x238   :  { %v539_v2 = vmul.f32 %v406_v59, %v1947_v52 }
 0x239   :  { %v410_v44 = vmul.f32 0.5, %v409_v57 }
 0x23a   :  { %v555_v8 = vmax.f32 %v539_v2, 0.0 }
 0x23b   :  { %v411_v58 = vsub.f32 1.5, %v410_v44  ;;  %v330_v48 = vpop.xlane.xlu2 %329 }
 0x23c   :  { %v1704_v61 = vpop.eup %1703  ;;  %v366_v62 = vmax.f32 %v330_v48, 1e-24 }
 0x23d   :  { %v412_v63 = vmul.f32 %v1702_v51, %v411_v58  ;;  %v418_v1 = vmul.f32 %v1704_v61, %v365_v53  ;;  %vm424_vm0 = vweird.f32 %v1704_v61 }
 0x23e   :  { %1705 = vrsqrt.f32 %v366_v62  ;;  %vm425_vm4 = vmor %vm423_vm1, %vm424_vm0  ;;  %vm433_vm6 = vweird.f32 %v366_v62 }
 0x23f   :  { %v419_v3 = vmul.f32 %v1704_v61, %v418_v1  ;;  %v416_v5 = vsel %vm415_vm15, %v1702_v51, %v412_v63 }
 0x240   :  { %v540_v6 = vmul.f32 %v416_v5, %v1953_v56 }
 0x241   :  { %v420_v7 = vmul.f32 0.5, %v419_v3 }
 0x242   :  { %v556_v10 = vmax.f32 %v540_v6, 0.0 }
 0x243   :  { %v421_v11 = vsub.f32 1.5, %v420_v7  ;;  %v333_v12 = vpop.xlane.xlu0 %332 }
 0x244   :  { %v1706_v13 = vpop.eup %1705  ;;  %v367_v15 = vmax.f32 %v333_v12, 1e-24  ;;  %v570_v16 = vpack.c.bf16 %v556_v10, %v555_v8 }
 0x245   :  { %v428_v17 = vmul.f32 %v1706_v13, %v366_v62  ;;  %v422_v18 = vmul.f32 %v1704_v61, %v421_v11  ;;  %vm434_vm5 = vweird.f32 %v1706_v13 }
 0x246   :  { %1707 = vrsqrt.f32 %v367_v15  ;;  %1625 = vmatmul.msk.bf16.gmra.mxu2 %vm312_vm2, %v570_v16  ;;  %vm435_vm7 = vmor %vm433_vm6, %vm434_vm5  ;;  %vm443_vm9 = vweird.f32 %v367_v15 }
 0x247   :  { %v429_v21 = vmul.f32 %v1706_v13, %v428_v17  ;;  %v426_v23 = vsel %vm425_vm4, %v1704_v61, %v422_v18 }
 0x248   :  { %v541_v31 = vmul.f32 %v426_v23, %v1959_v60 }
 0x249   :  { %v430_v52 = vmul.f32 0.5, %v429_v21 }
 0x24a   :  { %v557_v49 = vmax.f32 %v541_v31, 0.0 }
 0x24b   :  { %v431_v22 = vsub.f32 1.5, %v430_v52  ;;  %v336_v56 = vpop.xlane.xlu1 %335 }
 0x24c   :  { %v1708_v24 = vpop.eup %1707  ;;  %v368_v26 = vmax.f32 %v336_v56, 1e-24 }
 0x24d   :  { %v432_v28 = vmul.f32 %v1706_v13, %v431_v22  ;;  %v438_v29 = vmul.f32 %v1708_v24, %v367_v15  ;;  %vm444_vm8 = vweird.f32 %v1708_v24 }
 0x24e   :  { %1709 = vrsqrt.f32 %v368_v26  ;;  %vm445_vm10 = vmor %vm443_vm9, %vm444_vm8  ;;  %vm453_vm12 = vweird.f32 %v368_v26 }
 0x24f   :  { %v439_v32 = vmul.f32 %v1708_v24, %v438_v29  ;;  %v436_v33 = vsel %vm435_vm7, %v1706_v13, %v432_v28 }
 0x250   :  { %v542_v43 = vmul.f32 %v436_v33, %v1965_v0 }
 0x251   :  { %v440_v47 = vmul.f32 0.5, %v439_v32 }
 0x252   :  { %v558_v50 = vmax.f32 %v542_v43, 0.0 }
 0x253   :  { %v441_v51 = vsub.f32 1.5, %v440_v47  ;;  %v339_v53 = vpop.xlane.xlu2 %338 }
 0x254   :  { %v1710_v54 = vpop.eup %1709  ;;  %v369_v42 = vmax.f32 %v339_v53, 1e-24  ;;  %v571_v55 = vpack.c.bf16 %v558_v50, %v557_v49 }
 0x255   :  { %v448_v57 = vmul.f32 %v1710_v54, %v368_v26  ;;  %v442_v44 = vmul.f32 %v1708_v24, %v441_v51  ;;  %vm454_vm11 = vweird.f32 %v1710_v54 }
 0x256   :  { %1711 = vrsqrt.f32 %v369_v42  ;;  %1626 = vmatmul.msk.bf16.gmra.mxu2 %vm312_vm2, %v571_v55  ;;  %vm455_vm13 = vmor %vm453_vm12, %vm454_vm11  ;;  %vm463_vm15 = vweird.f32 %v369_v42 }
 0x257   :  { %v449_v58 = vmul.f32 %v1710_v54, %v448_v57  ;;  %v446_v59 = vsel %vm445_vm10, %v1708_v24, %v442_v44 }
 0x258   :  { %v543_v2 = vmul.f32 %v446_v59, %v1971_v4 }
 0x259   :  { %v450_v60 = vmul.f32 0.5, %v449_v58 }
 0x25a   :  { %v559_v8 = vmax.f32 %v543_v2, 0.0 }
 0x25b   :  { %v451_v48 = vsub.f32 1.5, %v450_v60  ;;  %v342_v0 = vpop.xlane.xlu0 %341 }
 0x25c   :  { %v1712_v61 = vpop.eup %1711  ;;  %v370_v62 = vmax.f32 %v342_v0, 1e-24 }
 0x25d   :  { %v452_v63 = vmul.f32 %v1710_v54, %v451_v48  ;;  %v458_v1 = vmul.f32 %v1712_v61, %v369_v42  ;;  %vm464_vm14 = vweird.f32 %v1712_v61 }
 0x25e   :  { %1713 = vrsqrt.f32 %v370_v62  ;;  %vm2051_vm0 = vmor %vm463_vm15, %vm464_vm14  ;;  %vm473_vm4 = vweird.f32 %v370_v62 }
 0x25f   :  { %v459_v3 = vmul.f32 %v1712_v61, %v458_v1  ;;  %v456_v5 = vsel %vm455_vm13, %v1710_v54, %v452_v63 }
 0x260   :  { %v544_v6 = vmul.f32 %v456_v5, %v1977_v9 }
 0x261   :  { %v460_v7 = vmul.f32 0.5, %v459_v3 }
 0x262   :  { %v560_v10 = vmax.f32 %v544_v6, 0.0 }
 0x263   :  { %v345_v11 = vpop.xlane.xlu1 %344  ;;  %v461_v13 = vsub.f32 1.5, %v460_v7  ;;  %v351_v18 = vpop.xlane.xlu0 %350 }
 0x264   :  { %v1714_v12 = vpop.eup %1713  ;;  %v371_v15 = vmax.f32 %v345_v11, 1e-24  ;;  %v572_v16 = vpack.c.bf16 %v560_v10, %v559_v8  ;;  %v2049_v22 = vmax.f32 %v351_v18, 1e-24 }
 0x265   :  { %v468_v17 = vmul.f32 %v1714_v12, %v370_v62  ;;  %v462_v52 = vmul.f32 %v1712_v61, %v461_v13  ;;  %vm474_vm1 = vweird.f32 %v1714_v12 }
 0x266   :  { %1715 = vrsqrt.f32 %v371_v15  ;;  %1627 = vmatmul.msk.bf16.gmra.mxu2 %vm312_vm2, %v572_v16  ;;  %vm475_vm5 = vmor %vm473_vm4, %vm474_vm1  ;;  %vm483_vm7 = vweird.f32 %v371_v15  ;;  %vm503_vm12 = vweird.f32 %v2049_v22 }
 0x267   :  { %v469_v21 = vmul.f32 %v1714_v12, %v468_v17  ;;  %v466_v31 = vsel %vm2051_vm0, %v1712_v61, %v462_v52  ;;  %1717 = vrsqrt.f32 %v2049_v22 }
 0x268   :  { %v545_v47 = vmul.f32 %v466_v31, %v1983_v14 }
 0x269   :  { %v470_v4 = vmul.f32 0.5, %v469_v21 }
 0x26a   :  { %v561_v42 = vmax.f32 %v545_v47, 0.0 }
 0x26b   :  { %v471_v56 = vsub.f32 1.5, %v470_v4  ;;  %v348_v23 = vpop.xlane.xlu2 %347  ;;  %v354_v24 = vpop.xlane.xlu1 %353 }
 0x26c   :  { %v1716_v26 = vpop.eup %1715  ;;  %v372_v28 = vmax.f32 %v348_v23, 1e-24  ;;  %v2055_v29 = vmax.f32 %v354_v24, 1e-24  ;;  %v360_v62 = vpop.xlane.xlu0 %359 }
 0x26d   :  { %v472_v32 = vmul.f32 %v1714_v12, %v471_v56  ;;  %v478_v33 = vmul.f32 %v1716_v26, %v371_v15  ;;  %v1718_v53 = vpop.eup %1717  ;;  %vm484_vm6 = vweird.f32 %v1716_v26  ;;  %v376_v3 = vmax.f32 %v360_v62, 1e-24 }
 0x26e   :  { %1719 = vrsqrt.f32 %v372_v28  ;;  %v498_v14 = vmul.f32 %v1718_v53, %v2049_v22  ;;  %vm485_vm8 = vmor %vm483_vm7, %vm484_vm6  ;;  %vm493_vm10 = vweird.f32 %v372_v28  ;;  %vm504_vm13 = vweird.f32 %v1718_v53 }
 0x26f   :  { %v479_v43 = vmul.f32 %v1716_v26, %v478_v33  ;;  %1721 = vrsqrt.f32 %v2055_v29  ;;  %v476_v49 = vsel %vm475_vm5, %v1714_v12, %v472_v32  ;;  %vm513_vm14 = vweird.f32 %v2055_v29  ;;  %vm505_vm0 = vmor %vm503_vm12, %vm504_vm13 }
 0x270   :  { %v546_v51 = vmul.f32 %v476_v49, %v1989_v19  ;;  %v499_v6 = vmul.f32 %v1718_v53, %v498_v14  ;;  %vm533_vm6 = vweird.f32 %v376_v3 }
 0x271   :  { %v480_v50 = vmul.f32 0.5, %v479_v43 }
 0x272   :  { %v562_v55 = vmax.f32 %v546_v51, 0.0  ;;  %v500_v12 = vmul.f32 0.5, %v499_v6 }
 0x273   :  { %v481_v54 = vsub.f32 1.5, %v480_v50  ;;  %v357_v0 = vpop.xlane.xlu2 %356 }
 0x274   :  { %v1720_v57 = vpop.eup %1719  ;;  %v573_v60 = vpack.c.bf16 %v562_v55, %v561_v42  ;;  %v375_v63 = vmax.f32 %v357_v0, 1e-24  ;;  %v501_v21 = vsub.f32 1.5, %v500_v12 }
 0x275   :  { %v1722_v44 = vpop.eup %1721  ;;  %v488_v58 = vmul.f32 %v1720_v57, %v372_v28  ;;  %v482_v59 = vmul.f32 %v1716_v26, %v481_v54  ;;  %vm494_vm9 = vweird.f32 %v1720_v57 }
 0x276   :  { %v508_v48 = vmul.f32 %v1722_v44, %v2055_v29  ;;  %1628 = vmatmul.msk.bf16.gmra.mxu2 %vm312_vm2, %v573_v60  ;;  %1723 = vrsqrt.f32 %v375_v63  ;;  %vm495_vm11 = vmor %vm493_vm10, %vm494_vm9  ;;  %vm514_vm15 = vweird.f32 %v1722_v44  ;;  %v502_v56 = vmul.f32 %v1718_v53, %v501_v21 }
 0x277   :  { %v489_v61 = vmul.f32 %v1720_v57, %v488_v58  ;;  %v486_v5 = vsel %vm485_vm8, %v1716_v26, %v482_v59  ;;  %1725 = vrsqrt.f32 %v376_v3  ;;  %vm515_vm1 = vmor %vm513_vm14, %vm514_vm15  ;;  %vm523_vm4 = vweird.f32 %v375_v63 }
 0x278   :  { %v509_v1 = vmul.f32 %v1722_v44, %v508_v48  ;;  %v547_v10 = vmul.f32 %v486_v5, %v2000_v25  ;;  %v506_v28 = vsel %vm505_vm0, %v1718_v53, %v502_v56 }
 0x279   :  { %v490_v19 = vmul.f32 0.5, %v489_v61  ;;  %v549_v22 = vmul.f32 %v506_v28, %v1992_v20 }
 0x27a   :  { %v510_v8 = vmul.f32 0.5, %v509_v1  ;;  %v563_v16 = vmax.f32 %v547_v10, 0.0 }
 0x27b   :  { %v491_v2 = vsub.f32 1.5, %v490_v19  ;;  %v565_v47 = vmax.f32 %v549_v22, 0.0 }
 0x27c   :  { %v511_v15 = vsub.f32 1.5, %v510_v8  ;;  %v1724_v18 = vpop.eup %1723 }
 0x27d   :  { %v492_v7 = vmul.f32 %v1720_v57, %v491_v2  ;;  %v1726_v4 = vpop.eup %1725  ;;  %v518_v25 = vmul.f32 %v1724_v18, %v375_v63  ;;  %vm524_vm5 = vweird.f32 %v1724_v18 }
 0x27e   :  { %v512_v9 = vmul.f32 %v1722_v44, %v511_v15  ;;  %vm534_vm7 = vweird.f32 %v1726_v4  ;;  %vm525_vm8 = vmor %vm523_vm4, %vm524_vm5 }
 0x27f   :  { %v496_v11 = vsel %vm495_vm11, %v1720_v57, %v492_v7  ;;  %v519_v23 = vmul.f32 %v1724_v18, %v518_v25  ;;  %vm535_vm9 = vmor %vm533_vm6, %vm534_vm7 }
 0x280   :  { %v548_v13 = vmul.f32 %v496_v11, %v2017_v45  ;;  %v528_v45 = vmul.f32 %v1726_v4, %v376_v3  ;;  %v516_v24 = vsel %vm515_vm1, %v1722_v44, %v512_v9 }
 0x281   :  { %v550_v31 = vmul.f32 %v516_v24, %v2003_v27  ;;  %v520_v32 = vmul.f32 0.5, %v519_v23 }
 0x282   :  { %v564_v17 = vmax.f32 %v548_v13, 0.0  ;;  %v529_v26 = vmul.f32 %v1726_v4, %v528_v45 }
 0x283   :  { %v566_v43 = vmax.f32 %v550_v31, 0.0  ;;  %v521_v29 = vsub.f32 1.5, %v520_v32 }
 0x284   :  { %v574_v52 = vpack.c.bf16 %v564_v17, %v563_v16  ;;  %v530_v33 = vmul.f32 0.5, %v529_v26  ;;  %v2088_v16 = vld [vmem:[%s2434_s5] ss:$0 sm:$0xff] }
 0x285   :  { %v575_v50 = vpack.c.bf16 %v566_v43, %v565_v47  ;;  %v522_v51 = vmul.f32 %v1724_v18, %v521_v29 }
 0x286   :  { %1629 = vmatmul.msk.bf16.gmra.mxu2 %vm312_vm2, %v574_v52  ;;  %v531_v49 = vsub.f32 1.5, %v530_v33 }
 0x287   :  { %v526_v27 = vsel %vm525_vm8, %v1724_v18, %v522_v51 }
 0x288   :  { %v532_v53 = vmul.f32 %v1726_v4, %v531_v49  ;;  %v551_v20 = vmul.f32 %v526_v27, %v2020_v46 }
 0x28a   :  { %v536_v54 = vsel %vm535_vm9, %v1726_v4, %v532_v53  ;;  %v567_v55 = vmax.f32 %v551_v20, 0.0 }
 0x28b   :  { %v552_v42 = vmul.f32 %v536_v54, %v2009_v30 }
 0x28d   :  { %v568_v57 = vmax.f32 %v552_v42, 0.0 }
 0x28f   :  { %v576_v44 = vpack.c.bf16 %v568_v57, %v567_v55 }
 0x296   :  { %1630 = vmatmul.msk.bf16.gmra.mxu2 %vm312_vm2, %v575_v50 }
 0x2a6   :  { %1631 = vmatmul.msk.bf16.gmra.mxu2 %vm312_vm2, %v576_v44 }
 0x2b9   :  { %v626_v58 = vpop.f32.mrf.mxu2 }
 0x2c1   :  { %v628_v60 = vpop.f32.mrf.mxu2 }
 0x2c2   :  { %v666_v15 = vpack.c.bf16 %v628_v60, %v626_v58 }
 0x2c9   :  { %v631_v48 = vpop.f32.mrf.mxu2 }
 0x2d1   :  { %v633_v0 = vpop.f32.mrf.mxu2 }
 0x2d2   :  { %v667_v13 = vpack.c.bf16 %v633_v0, %v631_v48 }
 0x2d9   :  { %v636_v59 = vpop.f32.mrf.mxu2 }
 0x2e1   :  { %v638_v61 = vpop.f32.mrf.mxu2 }
 0x2e2   :  { %v668_v12 = vpack.c.bf16 %v638_v61, %v636_v59 }
 0x2e9   :  { %v641_v14 = vpop.f32.mrf.mxu2 }
 0x2f1   :  { %v643_v62 = vpop.f32.mrf.mxu2 }
 0x2f2   :  { %v669_v19 = vpack.c.bf16 %v643_v62, %v641_v14 }
 0x2f9   :  { %v646_v63 = vpop.f32.mrf.mxu2 }
 0x301   :  { %v648_v1 = vpop.f32.mrf.mxu2 }
 0x302   :  { %v670_v11 = vpack.c.bf16 %v648_v1, %v646_v63 }
 0x309   :  { %v651_v2 = vpop.f32.mrf.mxu2 }
 0x311   :  { %v653_v46 = vpop.f32.mrf.mxu2 }
 0x312   :  { %v671_v10 = vpack.c.bf16 %v653_v46, %v651_v2 }
 0x319   :  { %v656_v3 = vpop.f32.mrf.mxu2 }
 0x321   :  { %v658_v30 = vpop.f32.mrf.mxu2 }
 0x322   :  { %v672_v8 = vpack.c.bf16 %v658_v30, %v656_v3 }
 0x329   :  { %v661_v5 = vpop.f32.mrf.mxu2 }
 0x331   :  { %v663_v6 = vpop.f32.mrf.mxu2 }
 0x332   :  { %v673_v7 = vpack.c.bf16 %v663_v6, %v661_v5 }
 0x334   :  { %678 = vmatpush.bf16.msrb.mxu3 %v673_v7  ;;  %v1009_v7 = vld [vmem:[%s2435_s6 + $0x8] sm:$0x3] }
 0x338   :  { %679 = vmatpush.bf16.msrb.mxu3 %v672_v8  ;;  %v1015_v8 = vunpack.c.l.b16 %v1009_v7 }
 0x33c   :  { %680 = vmatpush.bf16.msrb.mxu3 %v671_v10 }
 0x340   :  { %681 = vmatpush.bf16.msrb.mxu3 %v670_v11 }
 0x344   :  { %682 = vmatpush.bf16.msrb.mxu3 %v669_v19 }
 0x348   :  { %683 = vmatpush.bf16.msrb.mxu3 %v668_v12  ;;  %v1017_v12 = vpack.c.b16 %v1015_v8, %v1015_v8 }
 0x34c   :  { %684 = vmatpush.bf16.msrb.mxu3 %v667_v13 }
 0x350   :  { %685 = vmatpush.bf16.msrb.mxu3 %v666_v15  ;;  %v1044_v15 = vsel %vm613_vm3, %v1017_v12, 0 }
 0x351   :  { %1052 = vmatpush.bf16.msrb.mxu0 %v1044_v15 }
 0x353   :  { %686 = vmatmul.bf16.vlgmr.msrb.gmra.mxu3 %v1884_v34 }
 0x363   :  { %691 = vmatmul.bf16.gmra.mxu3 %v1890_v35 }
 0x373   :  { %696 = vmatmul.bf16.gmra.mxu3 %v1902_v37 }
 0x383   :  { %701 = vmatmul.bf16.gmra.mxu3 %v1914_v39 }
 0x393   :  { %706 = vmatmul.bf16.gmra.mxu3 %v1920_v40 }
 0x3a3   :  { %711 = vmatmul.bf16.gmra.mxu3 %v1926_v41 }
 0x3b3   :  { %716 = vmatmul.bf16.gmra.mxu3 %v1896_v36 }
 0x3c3   :  { %721 = vmatmul.bf16.gmra.mxu3 %v1908_v38 }
 0x3d6   :  { %v687_v34 = vpop.f32.mrf.mxu3 }
 0x3d7   :  { %v2091_v35 = vadd.f32 %v2088_v16, %v687_v34 }
 0x3d9   :  { %v727_v37 = vmul.f32 %v2091_v35, %v2091_v35 }
 0x3db   :  { %v743_v39 = vsel %vm312_vm2, %v727_v37, 0.0 }
 0x3dc   :  { %744 = vadd.xlane.f32.xlu1 %v743_v39  ;;  %v1673_v39 = vld [vmem:[%s2435_s6] sm:$0xff] }
 0x3dd   :  { %1053 = vmatpush.bf16.msrb.mxu0 %v1673_v39 }
 0x3de   :  { %v689_v40 = vpop.f32.mrf.mxu3 }
 0x3df   :  { %v2097_v36 = vadd.f32 %v2088_v16, %v689_v40 }
 0x3e1   :  { %v728_v38 = vmul.f32 %v2097_v36, %v2097_v36 }
 0x3e3   :  { %v746_v41 = vsel %vm312_vm2, %v728_v38, 0.0 }
 0x3e4   :  { %747 = vadd.xlane.f32.xlu2 %v746_v41 }
 0x3e6   :  { %v692_v17 = vpop.f32.mrf.mxu3 }
 0x3e7   :  { %v2103_v18 = vadd.f32 %v2088_v16, %v692_v17 }
 0x3e9   :  { %v729_v21 = vmul.f32 %v2103_v18, %v2103_v18 }
 0x3eb   :  { %v749_v52 = vsel %vm312_vm2, %v729_v21, 0.0 }
 0x3ec   :  { %750 = vadd.xlane.f32.xlu0 %v749_v52 }
 0x3ee   :  { %v694_v4 = vpop.f32.mrf.mxu3 }
 0x3ef   :  { %v2109_v9 = vadd.f32 %v2088_v16, %v694_v4 }
 0x3f1   :  { %v730_v25 = vmul.f32 %v2109_v9, %v2109_v9 }
 0x3f3   :  { %v752_v56 = vsel %vm312_vm2, %v730_v25, 0.0 }
 0x3f4   :  { %753 = vadd.xlane.f32.xlu1 %v752_v56 }
 0x3f6   :  { %v697_v45 = vpop.f32.mrf.mxu3 }
 0x3f7   :  { %v2115_v23 = vadd.f32 %v2088_v16, %v697_v45 }
 0x3f9   :  { %v731_v24 = vmul.f32 %v2115_v23, %v2115_v23 }
 0x3fb   :  { %v755_v26 = vsel %vm312_vm2, %v731_v24, 0.0 }
 0x3fc   :  { %756 = vadd.xlane.f32.xlu2 %v755_v26 }
 0x3fe   :  { %v699_v28 = vpop.f32.mrf.mxu3 }
 0x3ff   :  { %v2121_v31 = vadd.f32 %v2088_v16, %v699_v28 }
 0x401   :  { %v732_v32 = vmul.f32 %v2121_v31, %v2121_v31 }
 0x403   :  { %v758_v22 = vsel %vm312_vm2, %v732_v32, 0.0 }
 0x404   :  { %759 = vadd.xlane.f32.xlu0 %v758_v22 }
 0x406   :  { %v702_v33 = vpop.f32.mrf.mxu3 }
 0x407   :  { %v2127_v43 = vadd.f32 %v2088_v16, %v702_v33 }
 0x409   :  { %v733_v29 = vmul.f32 %v2127_v43, %v2127_v43 }
 0x40b   :  { %v761_v47 = vsel %vm312_vm2, %v733_v29, 0.0 }
 0x40c   :  { %762 = vadd.xlane.f32.xlu1 %v761_v47 }
 0x40e   :  { %v704_v49 = vpop.f32.mrf.mxu3 }
 0x40f   :  { %v2133_v50 = vadd.f32 %v2088_v16, %v704_v49 }
 0x411   :  { %v734_v51 = vmul.f32 %v2133_v50, %v2133_v50 }
 0x413   :  { %v764_v53 = vsel %vm312_vm2, %v734_v51, 0.0 }
 0x414   :  { %765 = vadd.xlane.f32.xlu2 %v764_v53 }
 0x416   :  { %v707_v27 = vpop.f32.mrf.mxu3 }
 0x417   :  { %v2139_v54 = vadd.f32 %v2088_v16, %v707_v27 }
 0x419   :  { %v735_v20 = vmul.f32 %v2139_v54, %v2139_v54 }
 0x41b   :  { %v767_v42 = vsel %vm312_vm2, %v735_v20, 0.0 }
 0x41c   :  { %768 = vadd.xlane.f32.xlu0 %v767_v42 }
 0x41e   :  { %v709_v55 = vpop.f32.mrf.mxu3 }
 0x41f   :  { %v2145_v57 = vadd.f32 %v2088_v16, %v709_v55 }
 0x421   :  { %v736_v44 = vmul.f32 %v2145_v57, %v2145_v57 }
 0x423   :  { %v770_v58 = vsel %vm312_vm2, %v736_v44, 0.0 }
 0x424   :  { %771 = vadd.xlane.f32.xlu1 %v770_v58 }
 0x426   :  { %v712_v60 = vpop.f32.mrf.mxu3 }
 0x427   :  { %v2151_v48 = vadd.f32 %v2088_v16, %v712_v60 }
 0x429   :  { %v737_v0 = vmul.f32 %v2151_v48, %v2151_v48 }
 0x42b   :  { %v773_v59 = vsel %vm312_vm2, %v737_v0, 0.0 }
 0x42c   :  { %774 = vadd.xlane.f32.xlu2 %v773_v59 }
 0x42e   :  { %v714_v61 = vpop.f32.mrf.mxu3 }
 0x42f   :  { %v2157_v14 = vadd.f32 %v2088_v16, %v714_v61 }
 0x431   :  { %v738_v62 = vmul.f32 %v2157_v14, %v2157_v14 }
 0x433   :  { %v776_v19 = vsel %vm312_vm2, %v738_v62, 0.0 }
 0x434   :  { %777 = vadd.xlane.f32.xlu0 %v776_v19 }
 0x436   :  { %v717_v63 = vpop.f32.mrf.mxu3 }
 0x437   :  { %v2163_v1 = vadd.f32 %v2088_v16, %v717_v63 }
 0x439   :  { %v739_v2 = vmul.f32 %v2163_v1, %v2163_v1 }
 0x43b   :  { %v779_v46 = vsel %vm312_vm2, %v739_v2, 0.0 }
 0x43c   :  { %780 = vadd.xlane.f32.xlu1 %v779_v46 }
 0x43e   :  { %v719_v3 = vpop.f32.mrf.mxu3 }
 0x43f   :  { %v2169_v30 = vadd.f32 %v2088_v16, %v719_v3 }
 0x441   :  { %v740_v5 = vmul.f32 %v2169_v30, %v2169_v30 }
 0x443   :  { %v782_v6 = vsel %vm312_vm2, %v740_v5, 0.0 }
 0x444   :  { %783 = vadd.xlane.f32.xlu2 %v782_v6 }
 0x446   :  { %v722_v10 = vpop.f32.mrf.mxu3 }
 0x447   :  { %v2178_v11 = vadd.f32 %v2088_v16, %v722_v10 }
 0x449   :  { %v741_v13 = vmul.f32 %v2178_v11, %v2178_v11 }
 0x44b   :  { %v785_v34 = vsel %vm312_vm2, %v741_v13, 0.0 }
 0x44c   :  { %786 = vadd.xlane.f32.xlu0 %v785_v34 }
 0x44e   :  { %v724_v37 = vpop.f32.mrf.mxu3 }
 0x44f   :  { %v2188_v40 = vadd.f32 %v2088_v16, %v724_v37  ;;  %v745_v38 = vpop.xlane.xlu1 %744 }
 0x450   :  { %v791_v41 = vmax.f32 %v745_v38, 1e-24 }
 0x451   :  { %v742_v17 = vmul.f32 %v2188_v40, %v2188_v40 }
 0x452   :  { %1727 = vrsqrt.f32 %v791_v41  ;;  %vm813_vm11 = vweird.f32 %v791_v41 }
 0x453   :  { %v788_v21 = vsel %vm312_vm2, %v742_v17, 0.0 }
 0x454   :  { %789 = vadd.xlane.f32.xlu1 %v788_v21 }
 0x457   :  { %v748_v52 = vpop.xlane.xlu2 %747 }
 0x458   :  { %v1728_v4 = vpop.eup %1727  ;;  %v792_v25 = vmax.f32 %v748_v52, 1e-24 }
 0x459   :  { %v808_v56 = vmul.f32 %v1728_v4, %v791_v41  ;;  %vm814_vm10 = vweird.f32 %v1728_v4 }
 0x45a   :  { %1729 = vrsqrt.f32 %v792_v25  ;;  %vm815_vm12 = vmor %vm813_vm11, %vm814_vm10  ;;  %vm823_vm14 = vweird.f32 %v792_v25 }
 0x45b   :  { %v809_v45 = vmul.f32 %v1728_v4, %v808_v56 }
 0x45d   :  { %v810_v24 = vmul.f32 0.5, %v809_v45 }
 0x45f   :  { %v811_v26 = vsub.f32 1.5, %v810_v24  ;;  %v751_v16 = vpop.xlane.xlu0 %750 }
 0x460   :  { %v1730_v28 = vpop.eup %1729  ;;  %v793_v32 = vmax.f32 %v751_v16, 1e-24 }
 0x461   :  { %v818_v22 = vmul.f32 %v1730_v28, %v792_v25  ;;  %v812_v33 = vmul.f32 %v1728_v4, %v811_v26  ;;  %vm824_vm13 = vweird.f32 %v1730_v28 }
 0x462   :  { %1731 = vrsqrt.f32 %v793_v32  ;;  %vm825_vm15 = vmor %vm823_vm14, %vm824_vm13  ;;  %vm833_vm1 = vweird.f32 %v793_v32 }
 0x463   :  { %v819_v29 = vmul.f32 %v1730_v28, %v818_v22  ;;  %v816_v49 = vsel %vm815_vm12, %v1728_v4, %v812_v33 }
 0x464   :  { %v967_v44 = vmul.f32 %v816_v49, %v2091_v35 }
 0x465   :  { %v820_v47 = vmul.f32 0.5, %v819_v29 }
 0x466   :  { %v983_v61 = vmax.f32 %v967_v44, 0.0 }
 0x467   :  { %v821_v51 = vsub.f32 1.5, %v820_v47  ;;  %v754_v53 = vpop.xlane.xlu1 %753 }
 0x468   :  { %v1732_v27 = vpop.eup %1731  ;;  %v794_v20 = vmax.f32 %v754_v53, 1e-24 }
 0x469   :  { %v822_v42 = vmul.f32 %v1730_v28, %v821_v51  ;;  %v828_v55 = vmul.f32 %v1732_v27, %v793_v32  ;;  %vm834_vm0 = vweird.f32 %v1732_v27 }
 0x46a   :  { %1733 = vrsqrt.f32 %v794_v20  ;;  %vm835_vm4 = vmor %vm833_vm1, %vm834_vm0  ;;  %vm843_vm6 = vweird.f32 %v794_v20 }
 0x46b   :  { %v826_v58 = vsel %vm825_vm15, %v1730_v28, %v822_v42  ;;  %v829_v60 = vmul.f32 %v1732_v27, %v828_v55 }
 0x46c   :  { %v968_v0 = vmul.f32 %v826_v58, %v2097_v36 }
 0x46d   :  { %v830_v59 = vmul.f32 0.5, %v829_v60 }
 0x46e   :  { %v984_v62 = vmax.f32 %v968_v0, 0.0 }
 0x46f   :  { %v831_v19 = vsub.f32 1.5, %v830_v59  ;;  %v757_v63 = vpop.xlane.xlu2 %756 }
 0x470   :  { %v1734_v2 = vpop.eup %1733  ;;  %v795_v46 = vmax.f32 %v757_v63, 1e-24  ;;  %v999_v3 = vpack.c.bf16 %v984_v62, %v983_v61 }
 0x471   :  { %v838_v5 = vmul.f32 %v1734_v2, %v794_v20  ;;  %v832_v6 = vmul.f32 %v1732_v27, %v831_v19  ;;  %vm844_vm5 = vweird.f32 %v1734_v2 }
 0x472   :  { %1735 = vrsqrt.f32 %v795_v46  ;;  %1636 = vmatmul.msk.bf16.vlgmr.msrb.gmra.mxu0 %vm312_vm2, %v999_v3  ;;  %vm845_vm7 = vmor %vm843_vm6, %vm844_vm5  ;;  %vm853_vm9 = vweird.f32 %v795_v46 }
 0x473   :  { %v839_v35 = vmul.f32 %v1734_v2, %v838_v5  ;;  %v836_v10 = vsel %vm835_vm4, %v1732_v27, %v832_v6 }
 0x474   :  { %v969_v37 = vmul.f32 %v836_v10, %v2103_v18 }
 0x475   :  { %v840_v7 = vmul.f32 0.5, %v839_v35 }
 0x476   :  { %v985_v21 = vmax.f32 %v969_v37, 0.0 }
 0x477   :  { %v841_v8 = vsub.f32 1.5, %v840_v7  ;;  %v760_v36 = vpop.xlane.xlu0 %759 }
 0x478   :  { %v1736_v12 = vpop.eup %1735  ;;  %v796_v13 = vmax.f32 %v760_v36, 1e-24 }
 0x479   :  { %v842_v15 = vmul.f32 %v1734_v2, %v841_v8  ;;  %v848_v34 = vmul.f32 %v1736_v12, %v795_v46  ;;  %vm854_vm8 = vweird.f32 %v1736_v12 }
 0x47a   :  { %1737 = vrsqrt.f32 %v796_v13  ;;  %vm855_vm10 = vmor %vm853_vm9, %vm854_vm8  ;;  %vm863_vm12 = vweird.f32 %v796_v13 }
 0x47b   :  { %v849_v39 = vmul.f32 %v1736_v12, %v848_v34  ;;  %v846_v38 = vsel %vm845_vm7, %v1734_v2, %v842_v15 }
 0x47c   :  { %v970_v41 = vmul.f32 %v846_v38, %v2109_v9 }
 0x47d   :  { %v850_v17 = vmul.f32 0.5, %v849_v39 }
 0x47e   :  { %v986_v52 = vmax.f32 %v970_v41, 0.0 }
 0x47f   :  { %v851_v4 = vsub.f32 1.5, %v850_v17  ;;  %v763_v25 = vpop.xlane.xlu1 %762 }
 0x480   :  { %v1738_v56 = vpop.eup %1737  ;;  %v797_v45 = vmax.f32 %v763_v25, 1e-24  ;;  %v1000_v24 = vpack.c.bf16 %v986_v52, %v985_v21 }
 0x481   :  { %v858_v26 = vmul.f32 %v1738_v56, %v796_v13  ;;  %v852_v16 = vmul.f32 %v1736_v12, %v851_v4  ;;  %vm864_vm11 = vweird.f32 %v1738_v56 }
 0x482   :  { %1739 = vrsqrt.f32 %v797_v45  ;;  %1637 = vmatmul.msk.bf16.gmra.mxu0 %vm312_vm2, %v1000_v24  ;;  %vm865_vm13 = vmor %vm863_vm12, %vm864_vm11  ;;  %vm873_vm15 = vweird.f32 %v797_v45 }
 0x483   :  { %v859_v28 = vmul.f32 %v1738_v56, %v858_v26  ;;  %v856_v22 = vsel %vm855_vm10, %v1736_v12, %v852_v16 }
 0x484   :  { %v971_v51 = vmul.f32 %v856_v22, %v2115_v23 }
 0x485   :  { %v860_v18 = vmul.f32 0.5, %v859_v28 }
 0x486   :  { %v987_v55 = vmax.f32 %v971_v51, 0.0 }
 0x487   :  { %v861_v32 = vsub.f32 1.5, %v860_v18  ;;  %v766_v9 = vpop.xlane.xlu2 %765 }
 0x488   :  { %v1740_v33 = vpop.eup %1739  ;;  %v798_v29 = vmax.f32 %v766_v9, 1e-24 }
 0x489   :  { %v862_v47 = vmul.f32 %v1738_v56, %v861_v32  ;;  %v868_v49 = vmul.f32 %v1740_v33, %v797_v45  ;;  %vm874_vm14 = vweird.f32 %v1740_v33 }
 0x48a   :  { %1741 = vrsqrt.f32 %v798_v29  ;;  %vm875_vm0 = vmor %vm873_vm15, %vm874_vm14  ;;  %vm883_vm4 = vweird.f32 %v798_v29 }
 0x48b   :  { %v869_v53 = vmul.f32 %v1740_v33, %v868_v49  ;;  %v866_v27 = vsel %vm865_vm13, %v1738_v56, %v862_v47 }
 0x48c   :  { %v972_v20 = vmul.f32 %v866_v27, %v2121_v31 }
 0x48d   :  { %v870_v42 = vmul.f32 0.5, %v869_v53 }
 0x48e   :  { %v988_v44 = vmax.f32 %v972_v20, 0.0 }
 0x48f   :  { %v871_v58 = vsub.f32 1.5, %v870_v42  ;;  %v769_v60 = vpop.xlane.xlu0 %768 }
 0x490   :  { %v1742_v0 = vpop.eup %1741  ;;  %v799_v59 = vmax.f32 %v769_v60, 1e-24  ;;  %v1001_v61 = vpack.c.bf16 %v988_v44, %v987_v55 }
 0x491   :  { %v878_v62 = vmul.f32 %v1742_v0, %v798_v29  ;;  %v872_v19 = vmul.f32 %v1740_v33, %v871_v58  ;;  %vm884_vm1 = vweird.f32 %v1742_v0 }
 0x492   :  { %1743 = vrsqrt.f32 %v799_v59  ;;  %1638 = vmatmul.msk.bf16.gmra.mxu0 %vm312_vm2, %v1001_v61  ;;  %vm885_vm5 = vmor %vm883_vm4, %vm884_vm1  ;;  %vm893_vm7 = vweird.f32 %v799_v59 }
 0x493   :  { %v879_v63 = vmul.f32 %v1742_v0, %v878_v62  ;;  %v876_v46 = vsel %vm875_vm0, %v1740_v33, %v872_v19 }
 0x494   :  { %v973_v7 = vmul.f32 %v876_v46, %v2127_v43 }
 0x495   :  { %v880_v23 = vmul.f32 0.5, %v879_v63 }
 0x496   :  { %v989_v13 = vmax.f32 %v973_v7, 0.0 }
 0x497   :  { %v881_v2 = vsub.f32 1.5, %v880_v23  ;;  %v772_v31 = vpop.xlane.xlu1 %771 }
 0x498   :  { %v1744_v3 = vpop.eup %1743  ;;  %v800_v5 = vmax.f32 %v772_v31, 1e-24 }
 0x499   :  { %v882_v6 = vmul.f32 %v1742_v0, %v881_v2  ;;  %v888_v35 = vmul.f32 %v1744_v3, %v799_v59  ;;  %vm894_vm6 = vweird.f32 %v1744_v3 }
 0x49a   :  { %1745 = vrsqrt.f32 %v800_v5  ;;  %vm895_vm8 = vmor %vm893_vm7, %vm894_vm6  ;;  %vm903_vm10 = vweird.f32 %v800_v5 }
 0x49b   :  { %v889_v8 = vmul.f32 %v1744_v3, %v888_v35  ;;  %v886_v36 = vsel %vm885_vm5, %v1742_v0, %v882_v6 }
 0x49c   :  { %v974_v10 = vmul.f32 %v886_v36, %v2133_v50 }
 0x49d   :  { %v890_v12 = vmul.f32 0.5, %v889_v8 }
 0x49e   :  { %v990_v15 = vmax.f32 %v974_v10, 0.0 }
 0x49f   :  { %v891_v34 = vsub.f32 1.5, %v890_v12  ;;  %v775_v37 = vpop.xlane.xlu2 %774 }
 0x4a0   :  { %v1746_v39 = vpop.eup %1745  ;;  %v801_v38 = vmax.f32 %v775_v37, 1e-24  ;;  %v1002_v41 = vpack.c.bf16 %v990_v15, %v989_v13 }
 0x4a1   :  { %v898_v17 = vmul.f32 %v1746_v39, %v800_v5  ;;  %v892_v21 = vmul.f32 %v1744_v3, %v891_v34  ;;  %vm904_vm9 = vweird.f32 %v1746_v39 }
 0x4a2   :  { %1747 = vrsqrt.f32 %v801_v38  ;;  %1639 = vmatmul.msk.bf16.gmra.mxu0 %vm312_vm2, %v1002_v41  ;;  %vm905_vm11 = vmor %vm903_vm10, %vm904_vm9  ;;  %vm913_vm13 = vweird.f32 %v801_v38 }
 0x4a3   :  { %v899_v52 = vmul.f32 %v1746_v39, %v898_v17  ;;  %v896_v4 = vsel %vm895_vm8, %v1744_v3, %v892_v21 }
 0x4a4   :  { %v975_v16 = vmul.f32 %v896_v4, %v2139_v54 }
 0x4a5   :  { %v900_v43 = vmul.f32 0.5, %v899_v52 }
 0x4a6   :  { %v991_v22 = vmax.f32 %v975_v16, 0.0 }
 0x4a7   :  { %v901_v50 = vsub.f32 1.5, %v900_v43  ;;  %v778_v25 = vpop.xlane.xlu0 %777 }
 0x4a8   :  { %v1748_v56 = vpop.eup %1747  ;;  %v802_v45 = vmax.f32 %v778_v25, 1e-24 }
 0x4a9   :  { %v902_v24 = vmul.f32 %v1746_v39, %v901_v50  ;;  %v908_v26 = vmul.f32 %v1748_v56, %v801_v38  ;;  %vm914_vm12 = vweird.f32 %v1748_v56 }
 0x4aa   :  { %1749 = vrsqrt.f32 %v802_v45  ;;  %vm915_vm14 = vmor %vm913_vm13, %vm914_vm12  ;;  %vm923_vm0 = vweird.f32 %v802_v45 }
 0x4ab   :  { %v906_v28 = vsel %vm905_vm11, %v1746_v39, %v902_v24  ;;  %v909_v18 = vmul.f32 %v1748_v56, %v908_v26 }
 0x4ac   :  { %v976_v32 = vmul.f32 %v906_v28, %v2145_v57 }
 0x4ad   :  { %v910_v9 = vmul.f32 0.5, %v909_v18 }
 0x4ae   :  { %v992_v33 = vmax.f32 %v976_v32, 0.0 }
 0x4af   :  { %v911_v29 = vsub.f32 1.5, %v910_v9  ;;  %v781_v47 = vpop.xlane.xlu1 %780 }
 0x4b0   :  { %v1750_v49 = vpop.eup %1749  ;;  %v803_v51 = vmax.f32 %v781_v47, 1e-24  ;;  %v1003_v53 = vpack.c.bf16 %v992_v33, %v991_v22 }
 0x4b1   :  { %v918_v27 = vmul.f32 %v1750_v49, %v802_v45  ;;  %v912_v20 = vmul.f32 %v1748_v56, %v911_v29  ;;  %vm924_vm15 = vweird.f32 %v1750_v49 }
 0x4b2   :  { %1751 = vrsqrt.f32 %v803_v51  ;;  %1640 = vmatmul.msk.bf16.gmra.mxu0 %vm312_vm2, %v1003_v53  ;;  %vm925_vm1 = vmor %vm923_vm0, %vm924_vm15  ;;  %vm933_vm5 = vweird.f32 %v803_v51 }
 0x4b3   :  { %v919_v54 = vmul.f32 %v1750_v49, %v918_v27  ;;  %v916_v55 = vsel %vm915_vm14, %v1748_v56, %v912_v20 }
 0x4b4   :  { %v977_v61 = vmul.f32 %v916_v55, %v2151_v48 }
 0x4b5   :  { %v920_v42 = vmul.f32 0.5, %v919_v54 }
 0x4b6   :  { %v993_v2 = vmax.f32 %v977_v61, 0.0 }
 0x4b7   :  { %v921_v57 = vsub.f32 1.5, %v920_v42  ;;  %v784_v44 = vpop.xlane.xlu2 %783 }
 0x4b8   :  { %v1752_v58 = vpop.eup %1751  ;;  %v804_v60 = vmax.f32 %v784_v44, 1e-24 }
 0x4b9   :  { %v922_v0 = vmul.f32 %v1750_v49, %v921_v57  ;;  %v928_v59 = vmul.f32 %v1752_v58, %v803_v51  ;;  %vm934_vm4 = vweird.f32 %v1752_v58 }
 0x4ba   :  { %1753 = vrsqrt.f32 %v804_v60  ;;  %vm935_vm6 = vmor %vm933_vm5, %vm934_vm4  ;;  %vm943_vm8 = vweird.f32 %v804_v60 }
 0x4bb   :  { %v926_v62 = vsel %vm925_vm1, %v1750_v49, %v922_v0  ;;  %v929_v19 = vmul.f32 %v1752_v58, %v928_v59 }
 0x4bc   :  { %v978_v63 = vmul.f32 %v926_v62, %v2157_v14 }
 0x4bd   :  { %v930_v23 = vmul.f32 0.5, %v929_v19 }
 0x4be   :  { %v994_v31 = vmax.f32 %v978_v63, 0.0 }
 0x4bf   :  { %v931_v46 = vsub.f32 1.5, %v930_v23  ;;  %v787_v3 = vpop.xlane.xlu0 %786 }
 0x4c0   :  { %v1754_v5 = vpop.eup %1753  ;;  %v805_v6 = vmax.f32 %v787_v3, 1e-24  ;;  %v1004_v35 = vpack.c.bf16 %v994_v31, %v993_v2  ;;  %v1791_v31 = vld [vmem:[%s2432_s0] sm:$0xff]  ;;  %v1793_v3 = vld [vmem:[%s2432_s0 + $0x8] sm:$0xff] }
 0x4c1   :  { %v938_v7 = vmul.f32 %v1754_v5, %v804_v60  ;;  %v932_v8 = vmul.f32 %v1752_v58, %v931_v46  ;;  %vm944_vm7 = vweird.f32 %v1754_v5  ;;  %v1792_v46 = vld [vmem:[%s2432_s0 + $0x38] sm:$0xff] }
 0x4c2   :  { %1755 = vrsqrt.f32 %v805_v6  ;;  %1641 = vmatmul.msk.bf16.gmra.mxu0 %vm312_vm2, %v1004_v35  ;;  %vm945_vm9 = vmor %vm943_vm8, %vm944_vm7  ;;  %vm953_vm11 = vweird.f32 %v805_v6  ;;  %v1796_v35 = vld [vmem:[%s2432_s0 + $0x20] sm:$0xff] }
 0x4c3   :  { %v939_v48 = vmul.f32 %v1754_v5, %v938_v7  ;;  %v936_v10 = vsel %vm935_vm6, %v1752_v58, %v932_v8  ;;  %v1797_v7 = vld [vmem:[%s2432_s0 + $0x28] sm:$0xff]  ;;  %v1798_v8 = vld [vmem:[%s2432_s0 + $0x30] sm:$0xff] }
 0x4c4   :  { %v979_v39 = vmul.f32 %v936_v10, %v2163_v1 }
 0x4c5   :  { %v940_v36 = vmul.f32 0.5, %v939_v48  ;;  %v2244_v48 = vld [vmem:[%s2436_s7] ss:$0 sm:$0xff] }
 0x4c6   :  { %v995_v52 = vmax.f32 %v979_v39, 0.0 }
 0x4c7   :  { %v941_v14 = vsub.f32 1.5, %v940_v36  ;;  %v790_v12 = vpop.xlane.xlu1 %789 }
 0x4c8   :  { %v1756_v13 = vpop.eup %1755  ;;  %v806_v15 = vmax.f32 %v790_v12, 1e-24 }
 0x4c9   :  { %v942_v34 = vmul.f32 %v1754_v5, %v941_v14  ;;  %v948_v37 = vmul.f32 %v1756_v13, %v805_v6  ;;  %vm954_vm10 = vweird.f32 %v1756_v13  ;;  %v1795_v6 = vld [vmem:[%s2432_s0 + $0x18] sm:$0xff] }
 0x4ca   :  { %1757 = vrsqrt.f32 %v806_v15  ;;  %vm955_vm12 = vmor %vm953_vm11, %vm954_vm10  ;;  %vm963_vm14 = vweird.f32 %v806_v15 }
 0x4cb   :  { %v946_v38 = vsel %vm945_vm9, %v1754_v5, %v942_v34  ;;  %v949_v41 = vmul.f32 %v1756_v13, %v948_v37  ;;  %v1794_v5 = vld [vmem:[%s2432_s0 + $0x10] sm:$0xff] }
 0x4cc   :  { %v980_v17 = vmul.f32 %v946_v38, %v2169_v30 }
 0x4cd   :  { %v950_v21 = vmul.f32 0.5, %v949_v41 }
 0x4ce   :  { %v996_v43 = vmax.f32 %v980_v17, 0.0 }
 0x4cf   :  { %v951_v4 = vsub.f32 1.5, %v950_v21 }
 0x4d0   :  { %v1758_v50 = vpop.eup %1757  ;;  %v1005_v25 = vpack.c.bf16 %v996_v43, %v995_v52 }
 0x4d1   :  { %v958_v56 = vmul.f32 %v1758_v50, %v806_v15  ;;  %v952_v45 = vmul.f32 %v1756_v13, %v951_v4  ;;  %vm964_vm13 = vweird.f32 %v1758_v50 }
 0x4d2   :  { %1642 = vmatmul.msk.bf16.gmra.mxu0 %vm312_vm2, %v1005_v25  ;;  %vm965_vm15 = vmor %vm963_vm14, %vm964_vm13 }
 0x4d3   :  { %v959_v24 = vmul.f32 %v1758_v50, %v958_v56  ;;  %v956_v26 = vsel %vm955_vm12, %v1756_v13, %v952_v45 }
 0x4d4   :  { %v981_v30 = vmul.f32 %v956_v26, %v2178_v11 }
 0x4d5   :  { %v960_v1 = vmul.f32 0.5, %v959_v24 }
 0x4d6   :  { %v997_v9 = vmax.f32 %v981_v30, 0.0 }
 0x4d7   :  { %v961_v16 = vsub.f32 1.5, %v960_v1 }
 0x4d9   :  { %v962_v28 = vmul.f32 %v1758_v50, %v961_v16 }
 0x4db   :  { %v966_v18 = vsel %vm965_vm15, %v1758_v50, %v962_v28 }
 0x4dc   :  { %v982_v32 = vmul.f32 %v966_v18, %v2188_v40 }
 0x4de   :  { %v998_v22 = vmax.f32 %v982_v32, 0.0 }
 0x4e0   :  { %v1006_v33 = vpack.c.bf16 %v998_v22, %v997_v9 }
 0x4e2   :  { %1643 = vmatmul.msk.bf16.gmra.mxu0 %vm312_vm2, %v1006_v33 }
 0x4ef   :  { %v1055_v29 = vpop.f32.mrf.mxu0 }
 0x4f7   :  { %v1057_v47 = vpop.f32.mrf.mxu0 }
 0x4f8   :  { %v1095_v49 = vpack.c.bf16 %v1057_v47, %v1055_v29 }
 0x4ff   :  { %v1060_v51 = vpop.f32.mrf.mxu0 }
 0x507   :  { %v1062_v53 = vpop.f32.mrf.mxu0 }
 0x508   :  { %v1096_v27 = vpack.c.bf16 %v1062_v53, %v1060_v51 }
 0x50f   :  { %v1065_v20 = vpop.f32.mrf.mxu0 }
 0x517   :  { %v1067_v54 = vpop.f32.mrf.mxu0 }
 0x518   :  { %v1097_v42 = vpack.c.bf16 %v1067_v54, %v1065_v20 }
 0x51f   :  { %v1070_v55 = vpop.f32.mrf.mxu0 }
 0x527   :  { %v1072_v11 = vpop.f32.mrf.mxu0 }
 0x528   :  { %v1098_v57 = vpack.c.bf16 %v1072_v11, %v1070_v55 }
 0x52f   :  { %v1075_v44 = vpop.f32.mrf.mxu0 }
 0x537   :  { %v1077_v58 = vpop.f32.mrf.mxu0 }
 0x538   :  { %v1099_v2 = vpack.c.bf16 %v1077_v58, %v1075_v44 }
 0x53f   :  { %v1080_v40 = vpop.f32.mrf.mxu0 }
 0x547   :  { %v1082_v60 = vpop.f32.mrf.mxu0 }
 0x548   :  { %v1100_v23 = vpack.c.bf16 %v1082_v60, %v1080_v40 }
 0x54f   :  { %v1085_v0 = vpop.f32.mrf.mxu0 }
 0x557   :  { %v1087_v59 = vpop.f32.mrf.mxu0 }
 0x558   :  { %v1101_v63 = vpack.c.bf16 %v1087_v59, %v1085_v0 }
 0x55f   :  { %v1090_v61 = vpop.f32.mrf.mxu0 }
 0x567   :  { %v1092_v62 = vpop.f32.mrf.mxu0 }
 0x568   :  { %v1102_v19 = vpack.c.bf16 %v1092_v62, %v1090_v61 }
 0x56a   :  { %1107 = vmatpush.bf16.msrb.mxu2 %v1102_v19  ;;  %1683 = vmatpush.bf16.msra.mxu3 %v1102_v19 }
 0x56e   :  { %1108 = vmatpush.bf16.msrb.mxu2 %v1101_v63  ;;  %1684 = vmatpush.bf16.msra.mxu3 %v1101_v63 }
 0x572   :  { %1109 = vmatpush.bf16.msrb.mxu2 %v1100_v23  ;;  %1685 = vmatpush.bf16.msra.mxu3 %v1100_v23 }
 0x576   :  { %1110 = vmatpush.bf16.msrb.mxu2 %v1099_v2  ;;  %1686 = vmatpush.bf16.msra.mxu3 %v1099_v2 }
 0x57a   :  { %1111 = vmatpush.bf16.msrb.mxu2 %v1098_v57  ;;  %1687 = vmatpush.bf16.msra.mxu3 %v1098_v57 }
 0x57e   :  { %1112 = vmatpush.bf16.msrb.mxu2 %v1097_v42  ;;  %1688 = vmatpush.bf16.msra.mxu3 %v1097_v42 }
 0x582   :  { %1113 = vmatpush.bf16.msrb.mxu2 %v1096_v27  ;;  %1689 = vmatpush.bf16.msra.mxu3 %v1096_v27 }
 0x586   :  { %1114 = vmatpush.bf16.msrb.mxu2 %v1095_v49  ;;  %1690 = vmatpush.bf16.msra.mxu3 %v1095_v49 }
 0x589   :  { %1115 = vmatmul.bf16.vlgmr.msrb.gmra.mxu2 %v1791_v31  ;;  %1150 = vmatmul.bf16.vlgmr.msra.gmra.mxu3 %v1792_v46 }
 0x599   :  { %1120 = vmatmul.bf16.gmra.mxu2 %v1793_v3 }
 0x5a9   :  { %1125 = vmatmul.bf16.gmra.mxu2 %v1794_v5 }
 0x5b9   :  { %1130 = vmatmul.bf16.gmra.mxu2 %v1795_v6 }
 0x5c9   :  { %1135 = vmatmul.bf16.gmra.mxu2 %v1796_v35 }
 0x5d9   :  { %1140 = vmatmul.bf16.gmra.mxu2 %v1797_v7 }
 0x5e9   :  { %1145 = vmatmul.bf16.gmra.mxu2 %v1798_v8 }
 0x60c   :  { %v1116_v36 = vpop.f32.mrf.mxu2  ;;  %v1151_v58 = vpop.f32.mrf.mxu3 }
 0x60d   :  { %v2247_v10 = vadd.f32 %v2244_v48, %v1116_v36  ;;  %v2318_v59 = vadd.f32 %v2244_v48, %v1151_v58 }
 0x60f   :  { %v1156_v14 = vmul.f32 %v2247_v10, %v2247_v10  ;;  %v1170_v62 = vmul.f32 %v2318_v59, %v2318_v59 }
 0x611   :  { %v1172_v12 = vsel %vm312_vm2, %v1156_v14, 0.0  ;;  %v1214_v2 = vsel %vm312_vm2, %v1170_v62, 0.0  ;;  %v1438_v14 = vld [vmem:[%s2437_s8 + $0x8] sm:$0x3] }
 0x612   :  { %1173 = vadd.xlane.f32.xlu2 %v1172_v12  ;;  %v1448_v12 = vunpack.c.l.b16 %v1438_v14 }
 0x614   :  { %v1118_v13 = vpop.f32.mrf.mxu2  ;;  %v1153_v63 = vpop.f32.mrf.mxu3 }
 0x615   :  { %v2253_v15 = vadd.f32 %v2244_v48, %v1118_v13  ;;  %v2330_v46 = vadd.f32 %v2244_v48, %v1153_v63  ;;  %v1450_v13 = vpack.c.b16 %v1448_v12, %v1448_v12 }
 0x617   :  { %v1157_v34 = vmul.f32 %v2253_v15, %v2253_v15  ;;  %v1171_v5 = vmul.f32 %v2330_v46, %v2330_v46 }
 0x619   :  { %v1175_v37 = vsel %vm312_vm2, %v1157_v34, 0.0  ;;  %v1217_v8 = vsel %vm312_vm2, %v1171_v5, 0.0  ;;  %v1477_v34 = vsel %vm613_vm3, %v1450_v13, 0 }
 0x61a   :  { %1176 = vadd.xlane.f32.xlu0 %v1175_v37  ;;  %1485 = vmatpush.bf16.msrb.mxu1 %v1477_v34 }
 0x61c   :  { %v1121_v39 = vpop.f32.mrf.mxu2 }
 0x61d   :  { %v2259_v38 = vadd.f32 %v2244_v48, %v1121_v39 }
 0x61f   :  { %v1158_v41 = vmul.f32 %v2259_v38, %v2259_v38 }
 0x621   :  { %v1178_v17 = vsel %vm312_vm2, %v1158_v41, 0.0 }
 0x622   :  { %1179 = vadd.xlane.f32.xlu1 %v1178_v17 }
 0x624   :  { %v1123_v21 = vpop.f32.mrf.mxu2 }
 0x625   :  { %v2265_v52 = vadd.f32 %v2244_v48, %v1123_v21 }
 0x627   :  { %v1159_v43 = vmul.f32 %v2265_v52, %v2265_v52 }
 0x629   :  { %v1181_v4 = vsel %vm312_vm2, %v1159_v43, 0.0 }
 0x62a   :  { %1182 = vadd.xlane.f32.xlu2 %v1181_v4 }
 0x62c   :  { %v1126_v50 = vpop.f32.mrf.mxu2 }
 0x62d   :  { %v2271_v25 = vadd.f32 %v2244_v48, %v1126_v50 }
 0x62f   :  { %v1160_v56 = vmul.f32 %v2271_v25, %v2271_v25 }
 0x631   :  { %v1184_v45 = vsel %vm312_vm2, %v1160_v56, 0.0 }
 0x632   :  { %1185 = vadd.xlane.f32.xlu0 %v1184_v45 }
 0x634   :  { %v1128_v24 = vpop.f32.mrf.mxu2 }
 0x635   :  { %v2277_v1 = vadd.f32 %v2244_v48, %v1128_v24 }
 0x637   :  { %v1161_v26 = vmul.f32 %v2277_v1, %v2277_v1 }
 0x639   :  { %v1187_v16 = vsel %vm312_vm2, %v1161_v26, 0.0 }
 0x63a   :  { %1188 = vadd.xlane.f32.xlu1 %v1187_v16 }
 0x63c   :  { %v1131_v28 = vpop.f32.mrf.mxu2 }
 0x63d   :  { %v2283_v30 = vadd.f32 %v2244_v48, %v1131_v28 }
 0x63f   :  { %v1162_v18 = vmul.f32 %v2283_v30, %v2283_v30 }
 0x641   :  { %v1190_v32 = vsel %vm312_vm2, %v1162_v18, 0.0 }
 0x642   :  { %1191 = vadd.xlane.f32.xlu2 %v1190_v32 }
 0x644   :  { %v1133_v9 = vpop.f32.mrf.mxu2 }
 0x645   :  { %v2289_v22 = vadd.f32 %v2244_v48, %v1133_v9 }
 0x647   :  { %v1163_v33 = vmul.f32 %v2289_v22, %v2289_v22 }
 0x649   :  { %v1193_v29 = vsel %vm312_vm2, %v1163_v33, 0.0 }
 0x64a   :  { %1194 = vadd.xlane.f32.xlu0 %v1193_v29 }
 0x64c   :  { %v1136_v47 = vpop.f32.mrf.mxu2 }
 0x64d   :  { %v2295_v49 = vadd.f32 %v2244_v48, %v1136_v47 }
 0x64f   :  { %v1164_v51 = vmul.f32 %v2295_v49, %v2295_v49 }
 0x651   :  { %v1196_v53 = vsel %vm312_vm2, %v1164_v51, 0.0 }
 0x652   :  { %1197 = vadd.xlane.f32.xlu1 %v1196_v53 }
 0x654   :  { %v1138_v27 = vpop.f32.mrf.mxu2 }
 0x655   :  { %v2301_v20 = vadd.f32 %v2244_v48, %v1138_v27 }
 0x657   :  { %v1165_v54 = vmul.f32 %v2301_v20, %v2301_v20 }
 0x659   :  { %v1199_v42 = vsel %vm312_vm2, %v1165_v54, 0.0 }
 0x65a   :  { %1200 = vadd.xlane.f32.xlu2 %v1199_v42 }
 0x65c   :  { %v1141_v55 = vpop.f32.mrf.mxu2 }
 0x65d   :  { %v2307_v11 = vadd.f32 %v2244_v48, %v1141_v55 }
 0x65f   :  { %v1166_v57 = vmul.f32 %v2307_v11, %v2307_v11 }
 0x661   :  { %v1202_v44 = vsel %vm312_vm2, %v1166_v57, 0.0 }
 0x662   :  { %1203 = vadd.xlane.f32.xlu0 %v1202_v44 }
 0x664   :  { %v1143_v40 = vpop.f32.mrf.mxu2 }
 0x665   :  { %v2313_v60 = vadd.f32 %v2244_v48, %v1143_v40 }
 0x667   :  { %v1167_v0 = vmul.f32 %v2313_v60, %v2313_v60 }
 0x669   :  { %v1205_v61 = vsel %vm312_vm2, %v1167_v0, 0.0 }
 0x66a   :  { %1206 = vadd.xlane.f32.xlu1 %v1205_v61 }
 0x66c   :  { %v1146_v19 = vpop.f32.mrf.mxu2 }
 0x66d   :  { %v2324_v23 = vadd.f32 %v2244_v48, %v1146_v19 }
 0x66f   :  { %v1168_v31 = vmul.f32 %v2324_v23, %v2324_v23 }
 0x671   :  { %v1208_v3 = vsel %vm312_vm2, %v1168_v31, 0.0 }
 0x672   :  { %1215 = vadd.xlane.f32.xlu1 %v1214_v2  ;;  %1209 = vadd.xlane.f32.xlu2 %v1208_v3 }
 0x674   :  { %v1148_v6 = vpop.f32.mrf.mxu2 }
 0x675   :  { %v2336_v35 = vadd.f32 %v2244_v48, %v1148_v6  ;;  %v1674_v48 = vld [vmem:[%s2437_s8] sm:$0xff] }
 0x676   :  { %1486 = vmatpush.bf16.msrb.mxu1 %v1674_v48 }
 0x677   :  { %v1169_v7 = vmul.f32 %v2336_v35, %v2336_v35 }
 0x679   :  { %v1211_v36 = vsel %vm312_vm2, %v1169_v7, 0.0 }
 0x67a   :  { %1212 = vadd.xlane.f32.xlu0 %v1211_v36  ;;  %1218 = vadd.xlane.f32.xlu2 %v1217_v8 }
 0x685   :  { %v1174_v37 = vpop.xlane.xlu2 %1173 }
 0x686   :  { %v1220_v39 = vmax.f32 %v1174_v37, 1e-24 }
 0x688   :  { %1759 = vrsqrt.f32 %v1220_v39  ;;  %vm1242_vm0 = vweird.f32 %v1220_v39 }
 0x68d   :  { %v1177_v41 = vpop.xlane.xlu0 %1176 }
 0x68e   :  { %v1760_v17 = vpop.eup %1759  ;;  %v1221_v21 = vmax.f32 %v1177_v41, 1e-24 }
 0x68f   :  { %v1237_v43 = vmul.f32 %v1760_v17, %v1220_v39  ;;  %vm1243_vm3 = vweird.f32 %v1760_v17 }
 0x690   :  { %1761 = vrsqrt.f32 %v1221_v21  ;;  %vm1244_vm1 = vmor %vm1242_vm0, %vm1243_vm3  ;;  %vm1252_vm5 = vweird.f32 %v1221_v21 }
 0x691   :  { %v1238_v4 = vmul.f32 %v1760_v17, %v1237_v43 }
 0x693   :  { %v1239_v50 = vmul.f32 0.5, %v1238_v4 }
 0x695   :  { %v1240_v56 = vsub.f32 1.5, %v1239_v50  ;;  %v1180_v45 = vpop.xlane.xlu1 %1179 }
 0x696   :  { %v1762_v24 = vpop.eup %1761  ;;  %v1222_v26 = vmax.f32 %v1180_v45, 1e-24 }
 0x697   :  { %v1247_v16 = vmul.f32 %v1762_v24, %v1221_v21  ;;  %v1241_v28 = vmul.f32 %v1760_v17, %v1240_v56  ;;  %vm1253_vm4 = vweird.f32 %v1762_v24 }
 0x698   :  { %1763 = vrsqrt.f32 %v1222_v26  ;;  %vm1254_vm6 = vmor %vm1252_vm5, %vm1253_vm4  ;;  %vm1262_vm8 = vweird.f32 %v1222_v26 }
 0x699   :  { %v1248_v18 = vmul.f32 %v1762_v24, %v1247_v16  ;;  %v1245_v9 = vsel %vm1244_vm1, %v1760_v17, %v1241_v28 }
 0x69a   :  { %v1396_v54 = vmul.f32 %v1245_v9, %v2247_v10 }
 0x69b   :  { %v1249_v32 = vmul.f32 0.5, %v1248_v18 }
 0x69c   :  { %v1412_v58 = vmax.f32 %v1396_v54, 0.0 }
 0x69d   :  { %v1250_v33 = vsub.f32 1.5, %v1249_v32  ;;  %v1183_v29 = vpop.xlane.xlu2 %1182 }
 0x69e   :  { %v1764_v47 = vpop.eup %1763  ;;  %v1223_v51 = vmax.f32 %v1183_v29, 1e-24 }
 0x69f   :  { %v1251_v53 = vmul.f32 %v1762_v24, %v1250_v33  ;;  %v1257_v27 = vmul.f32 %v1764_v47, %v1222_v26  ;;  %vm1263_vm7 = vweird.f32 %v1764_v47 }
 0x6a0   :  { %1765 = vrsqrt.f32 %v1223_v51  ;;  %vm1264_vm9 = vmor %vm1262_vm8, %vm1263_vm7  ;;  %vm1272_vm11 = vweird.f32 %v1223_v51 }
 0x6a1   :  { %v1255_v42 = vsel %vm1254_vm6, %v1762_v24, %v1251_v53  ;;  %v1258_v55 = vmul.f32 %v1764_v47, %v1257_v27 }
 0x6a2   :  { %v1397_v57 = vmul.f32 %v1255_v42, %v2253_v15 }
 0x6a3   :  { %v1259_v44 = vmul.f32 0.5, %v1258_v55 }
 0x6a4   :  { %v1413_v40 = vmax.f32 %v1397_v57, 0.0 }
 0x6a5   :  { %v1260_v0 = vsub.f32 1.5, %v1259_v44  ;;  %v1186_v61 = vpop.xlane.xlu0 %1185 }
 0x6a6   :  { %v1766_v62 = vpop.eup %1765  ;;  %v1224_v19 = vmax.f32 %v1186_v61, 1e-24  ;;  %v1428_v63 = vpack.c.bf16 %v1413_v40, %v1412_v58 }
 0x6a7   :  { %v1267_v2 = vmul.f32 %v1766_v62, %v1223_v51  ;;  %v1261_v31 = vmul.f32 %v1764_v47, %v1260_v0  ;;  %vm1273_vm10 = vweird.f32 %v1766_v62 }
 0x6a8   :  { %1767 = vrsqrt.f32 %v1224_v19  ;;  %1648 = vmatmul.msk.bf16.vlgmr.msrb.gmra.mxu1 %vm312_vm2, %v1428_v63  ;;  %vm1274_vm12 = vmor %vm1272_vm11, %vm1273_vm10  ;;  %vm1282_vm14 = vweird.f32 %v1224_v19 }
 0x6a9   :  { %v1268_v10 = vmul.f32 %v1766_v62, %v1267_v2  ;;  %v1265_v6 = vsel %vm1264_vm9, %v1764_v47, %v1261_v31 }
 0x6aa   :  { %v1398_v12 = vmul.f32 %v1265_v6, %v2259_v38 }
 0x6ab   :  { %v1269_v3 = vmul.f32 0.5, %v1268_v10 }
 0x6ac   :  { %v1414_v39 = vmax.f32 %v1398_v12, 0.0 }
 0x6ad   :  { %v1270_v5 = vsub.f32 1.5, %v1269_v3  ;;  %v1189_v15 = vpop.xlane.xlu1 %1188 }
 0x6ae   :  { %v1768_v7 = vpop.eup %1767  ;;  %v1225_v8 = vmax.f32 %v1189_v15, 1e-24 }
 0x6af   :  { %v1271_v36 = vmul.f32 %v1766_v62, %v1270_v5  ;;  %v1277_v14 = vmul.f32 %v1768_v7, %v1224_v19  ;;  %vm1283_vm13 = vweird.f32 %v1768_v7 }
 0x6b0   :  { %1769 = vrsqrt.f32 %v1225_v8  ;;  %vm1284_vm15 = vmor %vm1282_vm14, %vm1283_vm13  ;;  %vm1292_vm0 = vweird.f32 %v1225_v8 }
 0x6b1   :  { %v1278_v13 = vmul.f32 %v1768_v7, %v1277_v14  ;;  %v1275_v34 = vsel %vm1274_vm12, %v1766_v62, %v1271_v36 }
 0x6b2   :  { %v1399_v48 = vmul.f32 %v1275_v34, %v2265_v52 }
 0x6b3   :  { %v1279_v37 = vmul.f32 0.5, %v1278_v13 }
 0x6b4   :  { %v1415_v41 = vmax.f32 %v1399_v48, 0.0 }
 0x6b5   :  { %v1280_v17 = vsub.f32 1.5, %v1279_v37  ;;  %v1192_v21 = vpop.xlane.xlu2 %1191 }
 0x6b6   :  { %v1770_v43 = vpop.eup %1769  ;;  %v1226_v4 = vmax.f32 %v1192_v21, 1e-24  ;;  %v1429_v50 = vpack.c.bf16 %v1415_v41, %v1414_v39 }
 0x6b7   :  { %v1287_v56 = vmul.f32 %v1770_v43, %v1225_v8  ;;  %v1281_v45 = vmul.f32 %v1768_v7, %v1280_v17  ;;  %vm1293_vm3 = vweird.f32 %v1770_v43 }
 0x6b8   :  { %1771 = vrsqrt.f32 %v1226_v4  ;;  %1649 = vmatmul.msk.bf16.gmra.mxu1 %vm312_vm2, %v1429_v50  ;;  %vm1294_vm1 = vmor %vm1292_vm0, %vm1293_vm3  ;;  %vm1302_vm5 = vweird.f32 %v1226_v4 }
 0x6b9   :  { %v1288_v24 = vmul.f32 %v1770_v43, %v1287_v56  ;;  %v1285_v16 = vsel %vm1284_vm15, %v1768_v7, %v1281_v45 }
 0x6ba   :  { %v1400_v33 = vmul.f32 %v1285_v16, %v2271_v25 }
 0x6bb   :  { %v1289_v38 = vmul.f32 0.5, %v1288_v24 }
 0x6bc   :  { %v1416_v27 = vmax.f32 %v1400_v33, 0.0 }
 0x6bd   :  { %v1290_v26 = vsub.f32 1.5, %v1289_v38  ;;  %v1195_v52 = vpop.xlane.xlu0 %1194 }
 0x6be   :  { %v1772_v28 = vpop.eup %1771  ;;  %v1227_v18 = vmax.f32 %v1195_v52, 1e-24 }
 0x6bf   :  { %v1291_v32 = vmul.f32 %v1770_v43, %v1290_v26  ;;  %v1297_v9 = vmul.f32 %v1772_v28, %v1226_v4  ;;  %vm1303_vm4 = vweird.f32 %v1772_v28 }
 0x6c0   :  { %1773 = vrsqrt.f32 %v1227_v18  ;;  %vm1304_vm6 = vmor %vm1302_vm5, %vm1303_vm4  ;;  %vm1312_vm8 = vweird.f32 %v1227_v18 }
 0x6c1   :  { %v1298_v29 = vmul.f32 %v1772_v28, %v1297_v9  ;;  %v1295_v47 = vsel %vm1294_vm1, %v1770_v43, %v1291_v32 }
 0x6c2   :  { %v1401_v51 = vmul.f32 %v1295_v47, %v2277_v1 }
 0x6c3   :  { %v1299_v53 = vmul.f32 0.5, %v1298_v29 }
 0x6c4   :  { %v1417_v54 = vmax.f32 %v1401_v51, 0.0 }
 0x6c5   :  { %v1300_v42 = vsub.f32 1.5, %v1299_v53  ;;  %v1198_v55 = vpop.xlane.xlu1 %1197 }
 0x6c6   :  { %v1774_v57 = vpop.eup %1773  ;;  %v1228_v44 = vmax.f32 %v1198_v55, 1e-24  ;;  %v1430_v58 = vpack.c.bf16 %v1417_v54, %v1416_v27 }
 0x6c7   :  { %v1307_v40 = vmul.f32 %v1774_v57, %v1227_v18  ;;  %v1301_v0 = vmul.f32 %v1772_v28, %v1300_v42  ;;  %vm1313_vm7 = vweird.f32 %v1774_v57 }
 0x6c8   :  { %1775 = vrsqrt.f32 %v1228_v44  ;;  %1650 = vmatmul.msk.bf16.gmra.mxu1 %vm312_vm2, %v1430_v58  ;;  %vm1314_vm9 = vmor %vm1312_vm8, %vm1313_vm7  ;;  %vm1322_vm11 = vweird.f32 %v1228_v44 }
 0x6c9   :  { %v1308_v61 = vmul.f32 %v1774_v57, %v1307_v40  ;;  %v1305_v19 = vsel %vm1304_vm6, %v1772_v28, %v1301_v0 }
 0x6ca   :  { %v1402_v3 = vmul.f32 %v1305_v19, %v2283_v30 }
 0x6cb   :  { %v1309_v25 = vmul.f32 0.5, %v1308_v61 }
 0x6cc   :  { %v1418_v8 = vmax.f32 %v1402_v3, 0.0 }
 0x6cd   :  { %v1310_v62 = vsub.f32 1.5, %v1309_v25  ;;  %v1201_v1 = vpop.xlane.xlu2 %1200 }
 0x6ce   :  { %v1776_v63 = vpop.eup %1775  ;;  %v1229_v2 = vmax.f32 %v1201_v1, 1e-24 }
 0x6cf   :  { %v1311_v31 = vmul.f32 %v1774_v57, %v1310_v62  ;;  %v1317_v10 = vmul.f32 %v1776_v63, %v1228_v44  ;;  %vm1323_vm10 = vweird.f32 %v1776_v63 }
 0x6d0   :  { %1777 = vrsqrt.f32 %v1229_v2  ;;  %vm1324_vm12 = vmor %vm1322_vm11, %vm1323_vm10  ;;  %vm1332_vm14 = vweird.f32 %v1229_v2 }
 0x6d1   :  { %v1318_v5 = vmul.f32 %v1776_v63, %v1317_v10  ;;  %v1315_v15 = vsel %vm1314_vm9, %v1774_v57, %v1311_v31 }
 0x6d2   :  { %v1403_v6 = vmul.f32 %v1315_v15, %v2289_v22 }
 0x6d3   :  { %v1319_v7 = vmul.f32 0.5, %v1318_v5 }
 0x6d4   :  { %v1419_v36 = vmax.f32 %v1403_v6, 0.0 }
 0x6d5   :  { %v1320_v14 = vsub.f32 1.5, %v1319_v7  ;;  %v1204_v12 = vpop.xlane.xlu0 %1203 }
 0x6d6   :  { %v1778_v13 = vpop.eup %1777  ;;  %v1230_v34 = vmax.f32 %v1204_v12, 1e-24  ;;  %v1431_v48 = vpack.c.bf16 %v1419_v36, %v1418_v8 }
 0x6d7   :  { %v1327_v37 = vmul.f32 %v1778_v13, %v1229_v2  ;;  %v1321_v39 = vmul.f32 %v1776_v63, %v1320_v14  ;;  %vm1333_vm13 = vweird.f32 %v1778_v13 }
 0x6d8   :  { %1779 = vrsqrt.f32 %v1230_v34  ;;  %1651 = vmatmul.msk.bf16.gmra.mxu1 %vm312_vm2, %v1431_v48  ;;  %vm1334_vm15 = vmor %vm1332_vm14, %vm1333_vm13  ;;  %vm1342_vm0 = vweird.f32 %v1230_v34 }
 0x6d9   :  { %v1328_v41 = vmul.f32 %v1778_v13, %v1327_v37  ;;  %v1325_v21 = vsel %vm1324_vm12, %v1776_v63, %v1321_v39 }
 0x6da   :  { %v1404_v45 = vmul.f32 %v1325_v21, %v2295_v49 }
 0x6db   :  { %v1329_v30 = vmul.f32 0.5, %v1328_v41 }
 0x6dc   :  { %v1420_v16 = vmax.f32 %v1404_v45, 0.0 }
 0x6dd   :  { %v1330_v17 = vsub.f32 1.5, %v1329_v30  ;;  %v1207_v22 = vpop.xlane.xlu1 %1206 }
 0x6de   :  { %v1780_v43 = vpop.eup %1779  ;;  %v1231_v4 = vmax.f32 %v1207_v22, 1e-24 }
 0x6df   :  { %v1331_v50 = vmul.f32 %v1778_v13, %v1330_v17  ;;  %v1337_v56 = vmul.f32 %v1780_v43, %v1230_v34  ;;  %vm1343_vm3 = vweird.f32 %v1780_v43 }
 0x6e0   :  { %1781 = vrsqrt.f32 %v1231_v4  ;;  %vm1344_vm1 = vmor %vm1342_vm0, %vm1343_vm3  ;;  %vm1352_vm5 = vweird.f32 %v1231_v4 }
 0x6e1   :  { %v1338_v24 = vmul.f32 %v1780_v43, %v1337_v56  ;;  %v1335_v38 = vsel %vm1334_vm15, %v1778_v13, %v1331_v50 }
 0x6e2   :  { %v1405_v26 = vmul.f32 %v1335_v38, %v2301_v20 }
 0x6e3   :  { %v1339_v52 = vmul.f32 0.5, %v1338_v24 }
 0x6e4   :  { %v1421_v28 = vmax.f32 %v1405_v26, 0.0 }
 0x6e5   :  { %v1340_v18 = vsub.f32 1.5, %v1339_v52  ;;  %v1210_v32 = vpop.xlane.xlu2 %1209  ;;  %v1216_v51 = vpop.xlane.xlu1 %1215 }
 0x6e6   :  { %v1782_v9 = vpop.eup %1781  ;;  %v1232_v33 = vmax.f32 %v1210_v32, 1e-24  ;;  %v1432_v29 = vpack.c.bf16 %v1421_v28, %v1420_v16  ;;  %v2364_v54 = vmax.f32 %v1216_v51, 1e-24 }
 0x6e7   :  { %v1347_v47 = vmul.f32 %v1782_v9, %v1231_v4  ;;  %v1341_v53 = vmul.f32 %v1780_v43, %v1340_v18  ;;  %vm1353_vm4 = vweird.f32 %v1782_v9  ;;  %v1694_v18 = vld [vmem:[%s2438_s9] ss:$0 sm:$0xff] }
 0x6e8   :  { %1652 = vmatmul.msk.bf16.gmra.mxu1 %vm312_vm2, %v1432_v29  ;;  %1783 = vrsqrt.f32 %v1232_v33  ;;  %vm1354_vm6 = vmor %vm1352_vm5, %vm1353_vm4  ;;  %vm1362_vm8 = vweird.f32 %v1232_v33  ;;  %vm1382_vm13 = vweird.f32 %v2364_v54 }
 0x6e9   :  { %v1348_v27 = vmul.f32 %v1782_v9, %v1347_v47  ;;  %v1345_v57 = vsel %vm1344_vm1, %v1780_v43, %v1341_v53  ;;  %1785 = vrsqrt.f32 %v2364_v54 }
 0x6ea   :  { %v1406_v25 = vmul.f32 %v1345_v57, %v2307_v11 }
 0x6eb   :  { %v1349_v49 = vmul.f32 0.5, %v1348_v27 }
 0x6ec   :  { %v1422_v2 = vmax.f32 %v1406_v25, 0.0 }
 0x6ed   :  { %v1350_v20 = vsub.f32 1.5, %v1349_v49  ;;  %v1213_v42 = vpop.xlane.xlu0 %1212  ;;  %v1219_v55 = vpop.xlane.xlu2 %1218 }
 0x6ee   :  { %v1233_v44 = vmax.f32 %v1213_v42, 1e-24  ;;  %v1235_v58 = vmax.f32 %v1219_v55, 1e-24  ;;  %v1784_v40 = vpop.eup %1783 }
 0x6ef   :  { %v1351_v0 = vmul.f32 %v1782_v9, %v1350_v20  ;;  %v1357_v61 = vmul.f32 %v1784_v40, %v1232_v33  ;;  %v1786_v10 = vpop.eup %1785  ;;  %vm1363_vm7 = vweird.f32 %v1784_v40 }
 0x6f0   :  { %1787 = vrsqrt.f32 %v1233_v44  ;;  %v1377_v36 = vmul.f32 %v1786_v10, %v2364_v54  ;;  %vm1364_vm9 = vmor %vm1362_vm8, %vm1363_vm7  ;;  %vm1372_vm11 = vweird.f32 %v1233_v44  ;;  %vm1383_vm14 = vweird.f32 %v1786_v10 }
 0x6f1   :  { %1789 = vrsqrt.f32 %v1235_v58  ;;  %v1355_v62 = vsel %vm1354_vm6, %v1782_v9, %v1351_v0  ;;  %v1358_v1 = vmul.f32 %v1784_v40, %v1357_v61  ;;  %vm1392_vm15 = vweird.f32 %v1235_v58  ;;  %vm1384_vm0 = vmor %vm1382_vm13, %vm1383_vm14 }
 0x6f2   :  { %v1407_v19 = vmul.f32 %v1355_v62, %v2313_v60  ;;  %v1378_v13 = vmul.f32 %v1786_v10, %v1377_v36 }
 0x6f3   :  { %v1359_v63 = vmul.f32 0.5, %v1358_v1 }
 0x6f4   :  { %v1423_v31 = vmax.f32 %v1407_v19, 0.0  ;;  %v1379_v30 = vmul.f32 0.5, %v1378_v13 }
 0x6f5   :  { %v1360_v5 = vsub.f32 1.5, %v1359_v63 }
 0x6f6   :  { %v1788_v3 = vpop.eup %1787  ;;  %v1433_v15 = vpack.c.bf16 %v1423_v31, %v1422_v2  ;;  %v1380_v50 = vsub.f32 1.5, %v1379_v30 }
 0x6f7   :  { %v1790_v6 = vpop.eup %1789  ;;  %v1367_v7 = vmul.f32 %v1788_v3, %v1233_v44  ;;  %v1361_v11 = vmul.f32 %v1784_v40, %v1360_v5  ;;  %vm1373_vm10 = vweird.f32 %v1788_v3 }
 0x6f8   :  { %v1387_v8 = vmul.f32 %v1790_v6, %v1235_v58  ;;  %1653 = vmatmul.msk.bf16.gmra.mxu1 %vm312_vm2, %v1433_v15  ;;  %vm1374_vm12 = vmor %vm1372_vm11, %vm1373_vm10  ;;  %vm1393_vm3 = vweird.f32 %v1790_v6  ;;  %v1381_v24 = vmul.f32 %v1786_v10, %v1380_v50 }
 0x6f9   :  { %v1368_v14 = vmul.f32 %v1788_v3, %v1367_v7  ;;  %v1365_v34 = vsel %vm1364_vm9, %v1784_v40, %v1361_v11  ;;  %vm1394_vm1 = vmor %vm1392_vm15, %vm1393_vm3 }
 0x6fa   :  { %v1388_v60 = vmul.f32 %v1790_v6, %v1387_v8  ;;  %v1408_v41 = vmul.f32 %v1365_v34, %v2324_v23  ;;  %v1385_v38 = vsel %vm1384_vm0, %v1786_v10, %v1381_v24 }
 0x6fb   :  { %v1369_v12 = vmul.f32 0.5, %v1368_v14  ;;  %v1410_v26 = vmul.f32 %v1385_v38, %v2318_v59 }
 0x6fc   :  { %v1389_v39 = vmul.f32 0.5, %v1388_v60  ;;  %v1424_v4 = vmax.f32 %v1408_v41, 0.0 }
 0x6fd   :  { %v1370_v48 = vsub.f32 1.5, %v1369_v12  ;;  %v1426_v16 = vmax.f32 %v1410_v26, 0.0 }
 0x6fe   :  { %v1390_v21 = vsub.f32 1.5, %v1389_v39 }
 0x6ff   :  { %v1371_v37 = vmul.f32 %v1788_v3, %v1370_v48 }
 0x700   :  { %v1391_v45 = vmul.f32 %v1790_v6, %v1390_v21 }
 0x701   :  { %v1375_v17 = vsel %vm1374_vm12, %v1788_v3, %v1371_v37 }
 0x702   :  { %v1409_v22 = vmul.f32 %v1375_v17, %v2336_v35  ;;  %v1395_v23 = vsel %vm1394_vm1, %v1790_v6, %v1391_v45 }
 0x703   :  { %v1411_v35 = vmul.f32 %v1395_v23, %v2330_v46 }
 0x704   :  { %v1425_v43 = vmax.f32 %v1409_v22, 0.0 }
 0x705   :  { %v1427_v52 = vmax.f32 %v1411_v35, 0.0 }
 0x706   :  { %v1434_v56 = vpack.c.bf16 %v1425_v43, %v1424_v4 }
 0x707   :  { %v1435_v28 = vpack.c.bf16 %v1427_v52, %v1426_v16 }
 0x708   :  { %1654 = vmatmul.msk.bf16.gmra.mxu1 %vm312_vm2, %v1434_v56 }
 0x718   :  { %1655 = vmatmul.msk.bf16.gmra.mxu1 %vm312_vm2, %v1435_v28 }
 0x725   :  { %v1488_v32 = vpop.f32.mrf.mxu1 }
 0x726   :  { %v1489_v9 = vadd.f32 %v1694_v18, %v1488_v32 }
 0x728   :  { %1528 = vst [vmem:[%s2439_s10] sm:$0xff] %v1489_v9 }
 0x72d   :  { %v1490_v33 = vpop.f32.mrf.mxu1 }
 0x72e   :  { %v1491_v29 = vadd.f32 %v1694_v18, %v1490_v33 }
 0x730   :  { %1529 = vst [vmem:[%s2439_s10 + $0x8] sm:$0xff] %v1491_v29 }
 0x735   :  { %v1493_v59 = vpop.f32.mrf.mxu1 }
 0x736   :  { %v1494_v46 = vadd.f32 %v1694_v18, %v1493_v59 }
 0x738   :  { %1530 = vst [vmem:[%s2439_s10 + $0x10] sm:$0xff] %v1494_v46 }
 0x73d   :  { %v1495_v47 = vpop.f32.mrf.mxu1 }
 0x73e   :  { %v1496_v51 = vadd.f32 %v1694_v18, %v1495_v47 }
 0x740   :  { %1531 = vst [vmem:[%s2439_s10 + $0x18] sm:$0xff] %v1496_v51 }
 0x745   :  { %v1498_v53 = vpop.f32.mrf.mxu1 }
 0x746   :  { %v1499_v27 = vadd.f32 %v1694_v18, %v1498_v53 }
 0x748   :  { %1532 = vst [vmem:[%s2439_s10 + $0x20] sm:$0xff] %v1499_v27 }
 0x74d   :  { %v1500_v49 = vpop.f32.mrf.mxu1 }
 0x74e   :  { %v1501_v54 = vadd.f32 %v1694_v18, %v1500_v49 }
 0x750   :  { %1533 = vst [vmem:[%s2439_s10 + $0x28] sm:$0xff] %v1501_v54 }
 0x755   :  { %v1503_v20 = vpop.f32.mrf.mxu1 }
 0x756   :  { %v1504_v42 = vadd.f32 %v1694_v18, %v1503_v20 }
 0x758   :  { %1534 = vst [vmem:[%s2439_s10 + $0x30] sm:$0xff] %v1504_v42 }
 0x75d   :  { %v1505_v55 = vpop.f32.mrf.mxu1 }
 0x75e   :  { %v1506_v57 = vadd.f32 %v1694_v18, %v1505_v55 }
 0x760   :  { %1535 = vst [vmem:[%s2439_s10 + $0x38] sm:$0xff] %v1506_v57 }
 0x765   :  { %v1508_v44 = vpop.f32.mrf.mxu1 }
 0x766   :  { %v1509_v58 = vadd.f32 %v1694_v18, %v1508_v44 }
 0x768   :  { %1536 = vst [vmem:[%s2439_s10 + $0x40] sm:$0xff] %v1509_v58 }
 0x76d   :  { %v1510_v40 = vpop.f32.mrf.mxu1 }
 0x76e   :  { %v1511_v0 = vadd.f32 %v1694_v18, %v1510_v40 }
 0x770   :  { %1537 = vst [vmem:[%s2439_s10 + $0x48] sm:$0xff] %v1511_v0 }
 0x775   :  { %v1513_v61 = vpop.f32.mrf.mxu1 }
 0x776   :  { %v1514_v25 = vadd.f32 %v1694_v18, %v1513_v61 }
 0x778   :  { %1538 = vst [vmem:[%s2439_s10 + $0x50] sm:$0xff] %v1514_v25 }
 0x77d   :  { %v1515_v62 = vpop.f32.mrf.mxu1 }
 0x77e   :  { %v1516_v1 = vadd.f32 %v1694_v18, %v1515_v62 }
 0x780   :  { %1539 = vst [vmem:[%s2439_s10 + $0x58] sm:$0xff] %v1516_v1 }
 0x785   :  { %v1518_v19 = vpop.f32.mrf.mxu1 }
 0x786   :  { %v1519_v63 = vadd.f32 %v1694_v18, %v1518_v19 }
 0x788   :  { %1540 = vst [vmem:[%s2439_s10 + $0x60] sm:$0xff] %v1519_v63 }
 0x78d   :  { %v1520_v2 = vpop.f32.mrf.mxu1 }
 0x78e   :  { %v1521_v31 = vadd.f32 %v1694_v18, %v1520_v2 }
 0x790   :  { %1541 = vst [vmem:[%s2439_s10 + $0x68] sm:$0xff] %v1521_v31 }
 0x795   :  { %v1523_v10 = vpop.f32.mrf.mxu1 }
 0x796   :  { %v1524_v3 = vadd.f32 %v1694_v18, %v1523_v10 }
 0x798   :  { %1542 = vst [vmem:[%s2439_s10 + $0x70] sm:$0xff] %v1524_v3 }
 0x79d   :  { %v1525_v5 = vpop.f32.mrf.mxu1 }
 0x79e   :  { %v1526_v15 = vadd.f32 %v1694_v18, %v1525_v5 }
 0x7a0   :  { %1543 = vst [vmem:[%s2439_s10 + $0x78] sm:$0xff] %v1526_v15 }

</bundles_post_ra>
